<compile_context>
chip_gen: v7x
topology: tpu7x:2x2x1
jax: 0.10.0
libtpu: 0.0.40
codegen_flags: <defaults>
</compile_context>

<pallas_src>
import functools
import math

import jax
import jax.numpy as jnp
from jax.experimental import pallas as pl
from jax.experimental.pallas import tpu as pltpu


# ----------------------------------------------------------------------------
# Generation-aware scoped-VMEM budget (v5e/v6e: 128 MiB, v7x: 64 MiB physical)
# ----------------------------------------------------------------------------
@functools.lru_cache(maxsize=1)
def _vmem_limit():
    cap = 64 * 1024 * 1024                      # conservative (v7x-sized) fallback
    try:
        cap = int(pltpu.get_tpu_info().vmem_capacity_bytes)
    except Exception:
        pass
    # Leave ~16 MB headroom for compiler-internal scratch; never ask for >100 MB.
    return int(min(max(cap - 16 * 1024 * 1024, 32 * 1024 * 1024),
                   100 * 1024 * 1024))


# ----------------------------------------------------------------------------
# Small helpers
# ----------------------------------------------------------------------------
def _round_up(x, m):
    return ((x + m - 1) // m) * m


def _pick_tile(n, candidates):
    """Largest candidate tile that divides n exactly; else the full dim (legal)."""
    for c in candidates:
        if n >= c and n % c == 0:
            return c
    return n


def _row_tiling(m, target=512):
    """(padded_rows, row_tile): rows padded to a multiple of 8 (sublane) then tiled."""
    mp = _round_up(m, 8)
    if mp <= target:
        return mp, mp
    tm = target
    return _round_up(m, tm), tm


def _pad_rows(x, mp):
    m = x.shape[0]
    if mp == m:
        return x
    return jnp.pad(x, ((0, mp - m), (0, 0)))


def _gelu_tanh(x):
    # tanh-approximate GELU: the transcendental goes to the EUP slot and hides
    # under the MXU matmul.
    c = 0.7978845608028654  # sqrt(2/pi)
    return 0.5 * x * (1.0 + jnp.tanh(c * (x + 0.044715 * x * x * x)))


# ----------------------------------------------------------------------------
# Tiled linear kernel:  y = act(x @ w + b)
# ----------------------------------------------------------------------------
def _linear_kernel(*refs, activation, has_bias):
    if has_bias:
        x_ref, w_ref, b_ref, o_ref, acc_ref = refs
    else:
        x_ref, w_ref, o_ref, acc_ref = refs
        b_ref = None

    @pl.when(pl.program_id(2) == 0)
    def _():
        acc_ref[...] = jnp.zeros_like(acc_ref)

    acc_ref[...] += jnp.dot(x_ref[...], w_ref[...],
                            preferred_element_type=jnp.float32)

    @pl.when(pl.program_id(2) == pl.num_programs(2) - 1)
    def _():
        acc = acc_ref[...]
        if has_bias:
            acc = acc + b_ref[...]
        if activation == "gelu":
            acc = _gelu_tanh(acc)
        elif activation == "sigmoid":
            acc = jax.nn.sigmoid(acc)
        o_ref[...] = acc.astype(o_ref.dtype)


def linear(x, w, b=None, activation="none", out_dtype=jnp.bfloat16):
    """y = act(x @ w + b).  x:(M,K) bf16, w:(K,N) bf16, b:(1,N) f32 -> (M,N)."""
    M, K = x.shape
    N = w.shape[1]
    Mp, tm = _row_tiling(M, target=512)
    tn = _pick_tile(N, (512, 256, 128))
    tk = _pick_tile(K, (512, 256, 128))
    xp = _pad_rows(x, Mp)

    in_specs = [
        pl.BlockSpec((tm, tk), lambda i, j, k: (i, k)),
        # TODO(synk): pipeline_mode=pl.Buffered(3) on the W stream may help on v5e.
        pl.BlockSpec((tk, tn), lambda i, j, k: (k, j)),
    ]
    args = [xp, w]
    if b is not None:
        in_specs.append(pl.BlockSpec((1, tn), lambda i, j, k: (0, j)))
        args.append(b)

    out = pl.pallas_call(
        functools.partial(_linear_kernel, activation=activation,
                          has_bias=b is not None),
        out_shape=jax.ShapeDtypeStruct((Mp, N), out_dtype),
        grid=(Mp // tm, N // tn, K // tk),
        in_specs=in_specs,
        out_specs=pl.BlockSpec((tm, tn), lambda i, j, k: (i, j)),
        scratch_shapes=[pltpu.VMEM((tm, tn), jnp.float32)],
        compiler_params=pltpu.CompilerParams(
            dimension_semantics=("parallel", "parallel", "arbitrary"),
            vmem_limit_bytes=_vmem_limit()),
    )(*args)
    return out[:M] if Mp != M else out


# ----------------------------------------------------------------------------
# Fused kernel:  y = LayerNorm((x @ w + b) + residual)
# ----------------------------------------------------------------------------
def _linear_res_ln_kernel(x_ref, w_ref, b_ref, res_ref, g_ref, beta_ref,
                          o_ref, acc_ref, *, eps):
    @pl.when(pl.program_id(1) == 0)
    def _():
        acc_ref[...] = jnp.zeros_like(acc_ref)

    acc_ref[...] += jnp.dot(x_ref[...], w_ref[...],
                            preferred_element_type=jnp.float32)

    @pl.when(pl.program_id(1) == pl.num_programs(1) - 1)
    def _():
        y = acc_ref[...] + b_ref[...] + res_ref[...].astype(jnp.float32)
        mean = jnp.mean(y, axis=-1, keepdims=True)
        yc = y - mean
        var = jnp.mean(yc * yc, axis=-1, keepdims=True)
        inv = jax.lax.rsqrt(var + eps)
        o_ref[...] = (yc * inv * g_ref[...] + beta_ref[...]).astype(o_ref.dtype)


def linear_add_layernorm(x, w, b, res, gamma, beta, eps=1e-5,
                         out_dtype=jnp.bfloat16):
    """LN((x @ w + b) + res) over the last dim.  Full N per block (LN reduces over N)."""
    M, K = x.shape
    N = w.shape[1]
    Mp, tm = _row_tiling(M, target=512)
    tk = _pick_tile(K, (512, 256, 128))
    xp = _pad_rows(x, Mp)
    rp = _pad_rows(res, Mp)

    out = pl.pallas_call(
        functools.partial(_linear_res_ln_kernel, eps=eps),
        out_shape=jax.ShapeDtypeStruct((Mp, N), out_dtype),
        grid=(Mp // tm, K // tk),
        in_specs=[
            pl.BlockSpec((tm, tk), lambda i, k: (i, k)),
            pl.BlockSpec((tk, N), lambda i, k: (k, 0)),
            pl.BlockSpec((1, N), lambda i, k: (0, 0)),
            pl.BlockSpec((tm, N), lambda i, k: (i, 0)),
            pl.BlockSpec((1, N), lambda i, k: (0, 0)),
            pl.BlockSpec((1, N), lambda i, k: (0, 0)),
        ],
        out_specs=pl.BlockSpec((tm, N), lambda i, k: (i, 0)),
        scratch_shapes=[pltpu.VMEM((tm, N), jnp.float32)],
        compiler_params=pltpu.CompilerParams(
            dimension_semantics=("parallel", "arbitrary"),
            vmem_limit_bytes=_vmem_limit()),
    )(xp, w, b, rp, gamma, beta)
    return out[:M] if Mp != M else out


# ----------------------------------------------------------------------------
# Flash attention: grid (batch*head, q_tile, kv_tile), online softmax in VMEM
# ----------------------------------------------------------------------------
_NEG_INF = -1e30  # finite "minus infinity" so fully-masked tiles never NaN


def _flash_attn_kernel(q_ref, k_ref, v_ref, o_ref, m_sc, l_sc, acc_sc,
                       *, s_valid, tkv):
    j = pl.program_id(2)

    @pl.when(j == 0)
    def _():
        m_sc[...] = jnp.full_like(m_sc, _NEG_INF)
        l_sc[...] = jnp.zeros_like(l_sc)
        acc_sc[...] = jnp.zeros_like(acc_sc)

    q = q_ref[0]          # (tq, dh)  bf16, 1/sqrt(dh) already folded into W_q
    k = k_ref[0]          # (tkv, dh) bf16
    v = v_ref[0]          # (tkv, dh) bf16

    s = jax.lax.dot_general(q, k, (((1,), (1,)), ((), ())),
                            preferred_element_type=jnp.float32)      # (tq, tkv)

    if s_valid is not None:       # mask padded keys (static: only when S was padded)
        col = j * tkv + jax.lax.broadcasted_iota(jnp.int32, s.shape, 1)
        s = jnp.where(col < s_valid, s, _NEG_INF)

    m_prev = m_sc[...]
    m_new = jnp.maximum(m_prev, jnp.max(s, axis=-1, keepdims=True))
    alpha = jnp.exp(m_prev - m_new)
    p = jnp.exp(s - m_new)
    l_sc[...] = alpha * l_sc[...] + jnp.sum(p, axis=-1, keepdims=True)
    acc_sc[...] = alpha * acc_sc[...] + jnp.dot(
        p.astype(v.dtype), v, preferred_element_type=jnp.float32)
    m_sc[...] = m_new

    @pl.when(j == pl.num_programs(2) - 1)
    def _():
        # Deferred normalization: O(S*dh) scale instead of O(S^2).
        o_ref[0] = (acc_sc[...] * pl.reciprocal(l_sc[...], approx=True)
                    ).astype(o_ref.dtype)


def _attn_tiles(S):
    """(padded_S, q_tile, kv_tile) for the flash-attention grid."""
    if S <= 1024:
        sp = _round_up(S, 8)
        return sp, sp, sp
    tq, tkv = 256, 512            # kv tile >= 256 keeps the MXU N-dim filled
    return _round_up(S, 512), tq, tkv


def attention(qkv, *, B, S, nhead, dim):
    """qkv: (B*S, 3*dim) bf16 (concatenated Q|K|V) -> (B*S, dim) bf16."""
    dh = dim // nhead
    # Wrapper-side layout plumbing: (B*S, 3*dim) -> 3 x (B*nhead, S, dh).
    q, k, v = [t.reshape(B, S, nhead, dh).transpose(0, 2, 1, 3)
                .reshape(B * nhead, S, dh)
               for t in jnp.split(qkv.reshape(B, S, 3 * dim), 3, axis=-1)]

    sp, tq, tkv = _attn_tiles(S)
    if sp != S:
        pad = ((0, 0), (0, sp - S), (0, 0))
        q, k, v = jnp.pad(q, pad), jnp.pad(k, pad), jnp.pad(v, pad)
    bh = B * nhead

    out = pl.pallas_call(
        functools.partial(_flash_attn_kernel,
                          s_valid=(S if sp != S else None), tkv=tkv),
        out_shape=jax.ShapeDtypeStruct((bh, sp, dh), jnp.bfloat16),
        grid=(bh, sp // tq, sp // tkv),
        in_specs=[
            pl.BlockSpec((1, tq, dh), lambda b, i, j: (b, i, 0)),
            pl.BlockSpec((1, tkv, dh), lambda b, i, j: (b, j, 0)),
            pl.BlockSpec((1, tkv, dh), lambda b, i, j: (b, j, 0)),
        ],
        out_specs=pl.BlockSpec((1, tq, dh), lambda b, i, j: (b, i, 0)),
        scratch_shapes=[pltpu.VMEM((tq, 1), jnp.float32),
                        pltpu.VMEM((tq, 1), jnp.float32),
                        pltpu.VMEM((tq, dh), jnp.float32)],
        compiler_params=pltpu.CompilerParams(
            dimension_semantics=("parallel", "parallel", "arbitrary"),
            vmem_limit_bytes=_vmem_limit()),
    )(q, k, v)

    out = out[:, :S] if sp != S else out
    return (out.reshape(B, nhead, S, dh).transpose(0, 2, 1, 3)
            .reshape(B * S, dim))


# ----------------------------------------------------------------------------
# Model (glue in plain JAX, compute in Pallas kernels)
# ----------------------------------------------------------------------------
def encoder_layer(x, p, B, S, dim, nhead):
    """One post-norm TransformerEncoderLayer (PyTorch norm_first=False)."""
    # --- self-attention block ---
    qkv = linear(x, p["in_proj_w"], p["in_proj_b"])            # (B*S, 3*dim) bf16
    att = attention(qkv, B=B, S=S, nhead=nhead, dim=dim)       # (B*S, dim)  bf16
    x = linear_add_layernorm(att, p["out_proj_w"], p["out_proj_b"],
                             x, p["ln1_g"], p["ln1_b"])        # norm1(x + sa(x))

    # --- feed-forward block ---
    h = linear(x, p["lin1_w"], p["lin1_b"], activation="gelu") # (B*S, 4*dim)
    x = linear_add_layernorm(h, p["lin2_w"], p["lin2_b"],
                             x, p["ln2_g"], p["ln2_b"])        # norm2(x + ff(x))
    return x


def timesformer_forward(x, params, *, patch_size, dim, nhead):
    B, C, T, H, W = x.shape
    P = patch_size
    Hp, Wp = H // P, W // P

    # Conv3d(kernel=(1,P,P), stride=(1,P,P), bias=False)  ==  per-patch matmul.
    xb = x.astype(jnp.bfloat16)
    patches = xb.reshape(B, C, T, Hp, P, Wp, P)
    patches = patches.transpose(0, 2, 3, 5, 1, 4, 6)            # (B,T,Hp,Wp,C,P,P)
    patches = patches.reshape(B * T * Hp * Wp, C * P * P)
    tok = linear(patches, params["patch_w"])                    # no bias (Conv3d bias=False)
    tok = tok.reshape(B, T * Hp * Wp, dim).astype(jnp.float32)

    # cls token + positional embedding (tiny, plain JAX glue)
    cls = jnp.broadcast_to(params["cls_token"], (B, 1, dim))
    seq = jnp.concatenate([cls, tok], axis=1)                   # (B, S, dim)
    S = seq.shape[1]
    seq = (seq + params["pos_embed"][:, :S]).astype(jnp.bfloat16)

    # transformer encoder (the (S,B,D) permute in PyTorch is layout-only)
    h = seq.reshape(B * S, dim)
    for p in params["layers"]:
        h = encoder_layer(h, p, B, S, dim, nhead)
    h = h.reshape(B, S, dim)

    cls_out = h[:, 0]                                           # (B, dim)
    return linear(cls_out, params["fc_w"], params["fc_b"],
                  activation="sigmoid", out_dtype=jnp.float32)


# ----------------------------------------------------------------------------
# Deterministic synthetic parameters (shapes follow the PyTorch __init__)
# ----------------------------------------------------------------------------
def init_params(key, *, C, patch_size, dim, nhead, num_layers, total_patches,
                num_classes):
    ffn = dim * 4
    dh = dim // nhead
    scale = 1.0 / math.sqrt(dh)
    ks = jax.random.split(key, 4 + num_layers)

    def nrm(k, shape):
        return 0.02 * jax.random.normal(k, shape, jnp.float32)

    params = {
        "patch_w": nrm(ks[0], (C * patch_size * patch_size, dim)).astype(jnp.bfloat16),
        "cls_token": nrm(ks[1], (1, 1, dim)),
        "pos_embed": nrm(ks[2], (1, total_patches + 1, dim)),
        "fc_w": nrm(ks[3], (dim, num_classes)).astype(jnp.bfloat16),
        "fc_b": jnp.zeros((1, num_classes), jnp.float32),
        "layers": [],
    }
    for l in range(num_layers):
        lk = jax.random.split(ks[4 + l], 8)
        in_w = nrm(lk[0], (dim, 3 * dim))
        in_b = nrm(lk[1], (1, 3 * dim))
        # Fold the 1/sqrt(head_dim) attention scale into the Q projection
        # (exactly equivalent to PyTorch scaling q after in_proj).
        in_w = in_w.at[:, :dim].multiply(scale)
        in_b = in_b.at[:, :dim].multiply(scale)
        params["layers"].append({
            "in_proj_w": in_w.astype(jnp.bfloat16),
            "in_proj_b": in_b,
            "out_proj_w": nrm(lk[2], (dim, dim)).astype(jnp.bfloat16),
            "out_proj_b": nrm(lk[3], (1, dim)),
            "lin1_w": nrm(lk[4], (dim, ffn)).astype(jnp.bfloat16),
            "lin1_b": nrm(lk[5], (1, ffn)),
            "lin2_w": nrm(lk[6], (ffn, dim)).astype(jnp.bfloat16),
            "lin2_b": nrm(lk[7], (1, dim)),
            "ln1_g": jnp.ones((1, dim), jnp.float32),
            "ln1_b": jnp.zeros((1, dim), jnp.float32),
            "ln2_g": jnp.ones((1, dim), jnp.float32),
            "ln2_b": jnp.zeros((1, dim), jnp.float32),
        })
    return params


# ----------------------------------------------------------------------------
if __name__ == "__main__":
    # Small config consistent with the module: (B, C, T, H, W) video input.
    B, C = 2, 3
    num_frames = 2
    img_size = 16
    patch_size = 8
    dim = 32
    nhead = 8
    num_layers = 6          # hard-coded in the PyTorch module
    num_classes = 1
    num_patches = (img_size // patch_size) ** 2
    total_patches = num_patches * num_frames

    key = jax.random.PRNGKey(0)
    k_x, k_p = jax.random.split(key)
    x = jax.random.normal(k_x, (B, C, num_frames, img_size, img_size), jnp.float32)
    params = init_params(
        k_p, C=C, patch_size=patch_size, dim=dim, nhead=nhead,
        num_layers=num_layers, total_patches=total_patches,
        num_classes=num_classes,
    )

    fwd = jax.jit(functools.partial(
        timesformer_forward, patch_size=patch_size, dim=dim, nhead=nhead))
    out = fwd(x, params)
    out = jax.block_until_ready(out)

    assert out.shape == (B, num_classes)
    assert bool(jnp.all(jnp.isfinite(out)))
    assert bool(jnp.all((out > 0.0) & (out < 1.0)))   # sigmoid range
    print("KERNEL_OK")
</pallas_src>

<mosaic_0001>
module attributes {stable_mosaic.version = 11 : i64} {
  func.func @_linear_kernel(%arg0: i32, %arg1: i32, %arg2: i32, %arg3: memref<16x192xbf16, #tpu.memory_space<vmem>>, %arg4: memref<192x32xbf16, #tpu.memory_space<vmem>>, %arg5: memref<16x32xbf16, #tpu.memory_space<vmem>>, %arg6: memref<16x32xf32, #tpu.memory_space<vmem>>) attributes {dimension_semantics = [#tpu.dimension_semantics<parallel>, #tpu.dimension_semantics<parallel>, #tpu.dimension_semantics<arbitrary>], iteration_bounds = array<i64: 1, 1, 1>, scalar_prefetch = 0 : i64, scratch_operands = 1 : i64, tpu.core_type = #tpu.core_type<tc>, window_params = [{transform_indices = @transform_0, window_bounds = array<i64: 16, 192>}, {transform_indices = @transform_1, window_bounds = array<i64: 192, 32>}, {transform_indices = @transform_2, window_bounds = array<i64: 16, 32>}]} {
    %c0_i32 = arith.constant 0 : i32
    %0 = arith.cmpi eq, %arg2, %c0_i32 : i32
    %1 = arith.extui %0 : i1 to i32
    %c0_i32_0 = arith.constant 0 : i32
    %2 = arith.cmpi ne, %1, %c0_i32_0 : i32
    scf.if %2 {
      %cst_10 = arith.constant 0.000000e+00 : f32
      %12 = vector.broadcast %cst_10 : f32 to vector<16x32xf32>
      %c0_11 = arith.constant 0 : index
      %c0_12 = arith.constant 0 : index
      %13 = vector.load %arg6[%c0_11, %c0_12] : memref<16x32xf32, #tpu.memory_space<vmem>>, vector<16x32xf32>
      tpu.vector_store %arg6[%c0_11, %c0_12], %12 {strides = array<i32>} : memref<16x32xf32, #tpu.memory_space<vmem>>, vector<16x32xf32>,
    } else {
    }
    %c0 = arith.constant 0 : index
    %c0_1 = arith.constant 0 : index
    %3 = vector.load %arg6[%c0, %c0_1] : memref<16x32xf32, #tpu.memory_space<vmem>>, vector<16x32xf32>
    %c0_2 = arith.constant 0 : index
    %c0_3 = arith.constant 0 : index
    %4 = vector.load %arg3[%c0_2, %c0_3] : memref<16x192xbf16, #tpu.memory_space<vmem>>, vector<16x192xbf16>
    %c0_4 = arith.constant 0 : index
    %c0_5 = arith.constant 0 : index
    %5 = vector.load %arg4[%c0_4, %c0_5] : memref<192x32xbf16, #tpu.memory_space<vmem>>, vector<192x32xbf16>
    %cst = arith.constant dense<0.000000e+00> : vector<16x32xf32>
    %6 = tpu.matmul %4, %5, %cst {dimension_numbers = #tpu.dot_dimension_numbers<[1], [0], [0], [1], [0, 0, 1, 1], [], []>} : vector<16x192xbf16>, vector<192x32xbf16>, vector<16x32xf32> -> vector<16x32xf32>
    %7 = arith.addf %3, %6 : vector<16x32xf32>
    %c0_6 = arith.constant 0 : index
    %c0_7 = arith.constant 0 : index
    %8 = vector.load %arg6[%c0_6, %c0_7] : memref<16x32xf32, #tpu.memory_space<vmem>>, vector<16x32xf32>
    tpu.vector_store %arg6[%c0_6, %c0_7], %7 {strides = array<i32>} : memref<16x32xf32, #tpu.memory_space<vmem>>, vector<16x32xf32>,
    %c0_i32_8 = arith.constant 0 : i32
    %9 = arith.cmpi eq, %arg2, %c0_i32_8 : i32
    %10 = arith.extui %9 : i1 to i32
    %c0_i32_9 = arith.constant 0 : i32
    %11 = arith.cmpi ne, %10, %c0_i32_9 : i32
    scf.if %11 {
      %c0_10 = arith.constant 0 : index
      %c0_11 = arith.constant 0 : index
      %12 = vector.load %arg6[%c0_10, %c0_11] : memref<16x32xf32, #tpu.memory_space<vmem>>, vector<16x32xf32>
      %13 = arith.truncf %12 : vector<16x32xf32> to vector<16x32xbf16>
      %c0_12 = arith.constant 0 : index
      %c0_13 = arith.constant 0 : index
      %14 = vector.load %arg5[%c0_12, %c0_13] : memref<16x32xbf16, #tpu.memory_space<vmem>>, vector<16x32xbf16>
      tpu.vector_store %arg5[%c0_12, %c0_13], %13 {strides = array<i32>} : memref<16x32xbf16, #tpu.memory_space<vmem>>, vector<16x32xbf16>,
    } else {
    }
    return
  }
  func.func @transform_0(%arg0: i32, %arg1: i32, %arg2: i32) -> (i32, i32) {
    %c0_i32 = arith.constant 0 : i32
    return %arg0, %arg2 : i32, i32
  }
  func.func @transform_1(%arg0: i32, %arg1: i32, %arg2: i32) -> (i32, i32) {
    %c0_i32 = arith.constant 0 : i32
    return %arg2, %arg1 : i32, i32
  }
  func.func @transform_2(%arg0: i32, %arg1: i32, %arg2: i32) -> (i32, i32) {
    %c0_i32 = arith.constant 0 : i32
    return %arg0, %arg1 : i32, i32
  }
}

module attributes {stable_mosaic.version = 11 : i64} {
  func.func @_linear_kernel(%arg0: i32, %arg1: i32, %arg2: i32, %arg3: memref<24x32xbf16, #tpu.memory_space<vmem>>, %arg4: memref<32x96xbf16, #tpu.memory_space<vmem>>, %arg5: memref<1x96xf32, #tpu.memory_space<vmem>>, %arg6: memref<24x96xbf16, #tpu.memory_space<vmem>>, %arg7: memref<24x96xf32, #tpu.memory_space<vmem>>) attributes {dimension_semantics = [#tpu.dimension_semantics<parallel>, #tpu.dimension_semantics<parallel>, #tpu.dimension_semantics<arbitrary>], iteration_bounds = array<i64: 1, 1, 1>, scalar_prefetch = 0 : i64, scratch_operands = 1 : i64, tpu.core_type = #tpu.core_type<tc>, window_params = [{transform_indices = @transform_0, window_bounds = array<i64: 24, 32>}, {transform_indices = @transform_1, window_bounds = array<i64: 32, 96>}, {transform_indices = @transform_2, window_bounds = array<i64: 1, 96>}, {transform_indices = @transform_3, window_bounds = array<i64: 24, 96>}]} {
    %c0_i32 = arith.constant 0 : i32
    %0 = arith.cmpi eq, %arg2, %c0_i32 : i32
    %1 = arith.extui %0 : i1 to i32
    %c0_i32_0 = arith.constant 0 : i32
    %2 = arith.cmpi ne, %1, %c0_i32_0 : i32
    scf.if %2 {
      %cst_10 = arith.constant 0.000000e+00 : f32
      %12 = vector.broadcast %cst_10 : f32 to vector<24x96xf32>
      %c0_11 = arith.constant 0 : index
      %c0_12 = arith.constant 0 : index
      %13 = vector.load %arg7[%c0_11, %c0_12] : memref<24x96xf32, #tpu.memory_space<vmem>>, vector<24x96xf32>
      tpu.vector_store %arg7[%c0_11, %c0_12], %12 {strides = array<i32>} : memref<24x96xf32, #tpu.memory_space<vmem>>, vector<24x96xf32>,
    } else {
    }
    %c0 = arith.constant 0 : index
    %c0_1 = arith.constant 0 : index
    %3 = vector.load %arg7[%c0, %c0_1] : memref<24x96xf32, #tpu.memory_space<vmem>>, vector<24x96xf32>
    %c0_2 = arith.constant 0 : index
    %c0_3 = arith.constant 0 : index
    %4 = vector.load %arg3[%c0_2, %c0_3] : memref<24x32xbf16, #tpu.memory_space<vmem>>, vector<24x32xbf16>
    %c0_4 = arith.constant 0 : index
    %c0_5 = arith.constant 0 : index
    %5 = vector.load %arg4[%c0_4, %c0_5] : memref<32x96xbf16, #tpu.memory_space<vmem>>, vector<32x96xbf16>
    %cst = arith.constant dense<0.000000e+00> : vector<24x96xf32>
    %6 = tpu.matmul %4, %5, %cst {dimension_numbers = #tpu.dot_dimension_numbers<[1], [0], [0], [1], [0, 0, 1, 1], [], []>} : vector<24x32xbf16>, vector<32x96xbf16>, vector<24x96xf32> -> vector<24x96xf32>
    %7 = arith.addf %3, %6 : vector<24x96xf32>
    %c0_6 = arith.constant 0 : index
    %c0_7 = arith.constant 0 : index
    %8 = vector.load %arg7[%c0_6, %c0_7] : memref<24x96xf32, #tpu.memory_space<vmem>>, vector<24x96xf32>
    tpu.vector_store %arg7[%c0_6, %c0_7], %7 {strides = array<i32>} : memref<24x96xf32, #tpu.memory_space<vmem>>, vector<24x96xf32>,
    %c0_i32_8 = arith.constant 0 : i32
    %9 = arith.cmpi eq, %arg2, %c0_i32_8 : i32
    %10 = arith.extui %9 : i1 to i32
    %c0_i32_9 = arith.constant 0 : i32
    %11 = arith.cmpi ne, %10, %c0_i32_9 : i32
    scf.if %11 {
      %c0_10 = arith.constant 0 : index
      %c0_11 = arith.constant 0 : index
      %12 = vector.load %arg7[%c0_10, %c0_11] : memref<24x96xf32, #tpu.memory_space<vmem>>, vector<24x96xf32>
      %c0_12 = arith.constant 0 : index
      %c0_13 = arith.constant 0 : index
      %13 = vector.load %arg5[%c0_12, %c0_13] : memref<1x96xf32, #tpu.memory_space<vmem>>, vector<1x96xf32>
      %14 = vector.broadcast %13 : vector<1x96xf32> to vector<24x96xf32>
      %15 = arith.addf %12, %14 : vector<24x96xf32>
      %16 = arith.truncf %15 : vector<24x96xf32> to vector<24x96xbf16>
      %c0_14 = arith.constant 0 : index
      %c0_15 = arith.constant 0 : index
      %17 = vector.load %arg6[%c0_14, %c0_15] : memref<24x96xbf16, #tpu.memory_space<vmem>>, vector<24x96xbf16>
      tpu.vector_store %arg6[%c0_14, %c0_15], %16 {strides = array<i32>} : memref<24x96xbf16, #tpu.memory_space<vmem>>, vector<24x96xbf16>,
    } else {
    }
    return
  }
  func.func @transform_0(%arg0: i32, %arg1: i32, %arg2: i32) -> (i32, i32) {
    %c0_i32 = arith.constant 0 : i32
    return %arg0, %arg2 : i32, i32
  }
  func.func @transform_1(%arg0: i32, %arg1: i32, %arg2: i32) -> (i32, i32) {
    %c0_i32 = arith.constant 0 : i32
    return %arg2, %arg1 : i32, i32
  }
  func.func @transform_2(%arg0: i32, %arg1: i32, %arg2: i32) -> (i32, i32) {
    %c0_i32 = arith.constant 0 : i32
    %c0_i32_0 = arith.constant 0 : i32
    return %c0_i32, %arg1 : i32, i32
  }
  func.func @transform_3(%arg0: i32, %arg1: i32, %arg2: i32) -> (i32, i32) {
    %c0_i32 = arith.constant 0 : i32
    return %arg0, %arg1 : i32, i32
  }
}

module attributes {stable_mosaic.version = 11 : i64} {
  func.func @_flash_attn_kernel(%arg0: i32, %arg1: i32, %arg2: i32, %arg3: memref<1x16x4xbf16, #tpu.memory_space<vmem>>, %arg4: memref<1x16x4xbf16, #tpu.memory_space<vmem>>, %arg5: memref<1x16x4xbf16, #tpu.memory_space<vmem>>, %arg6: memref<1x16x4xbf16, #tpu.memory_space<vmem>>, %arg7: memref<16x1xf32, #tpu.memory_space<vmem>>, %arg8: memref<16x1xf32, #tpu.memory_space<vmem>>, %arg9: memref<16x4xf32, #tpu.memory_space<vmem>>) attributes {dimension_semantics = [#tpu.dimension_semantics<parallel>, #tpu.dimension_semantics<parallel>, #tpu.dimension_semantics<arbitrary>], iteration_bounds = array<i64: 16, 1, 1>, scalar_prefetch = 0 : i64, scratch_operands = 3 : i64, tpu.core_type = #tpu.core_type<tc>, window_params = [{transform_indices = @transform_0, window_bounds = array<i64: 1, 16, 4>}, {transform_indices = @transform_1, window_bounds = array<i64: 1, 16, 4>}, {transform_indices = @transform_2, window_bounds = array<i64: 1, 16, 4>}, {transform_indices = @transform_3, window_bounds = array<i64: 1, 16, 4>}]} {
    %c0_i32 = arith.constant 0 : i32
    %0 = arith.cmpi eq, %arg2, %c0_i32 : i32
    %1 = arith.extui %0 : i1 to i32
    %c0_i32_0 = arith.constant 0 : i32
    %2 = arith.cmpi ne, %1, %c0_i32_0 : i32
    scf.if %2 {
      %cst_27 = arith.constant -1.000000e+30 : f32
      %44 = vector.broadcast %cst_27 : f32 to vector<16x1xf32>
      %c0_28 = arith.constant 0 : index
      %c0_29 = arith.constant 0 : index
      %45 = vector.load %arg7[%c0_28, %c0_29] : memref<16x1xf32, #tpu.memory_space<vmem>>, vector<16x1xf32>
      tpu.vector_store %arg7[%c0_28, %c0_29], %44 {strides = array<i32>} : memref<16x1xf32, #tpu.memory_space<vmem>>, vector<16x1xf32>,
      %cst_30 = arith.constant 0.000000e+00 : f32
      %46 = vector.broadcast %cst_30 : f32 to vector<16x1xf32>
      %c0_31 = arith.constant 0 : index
      %c0_32 = arith.constant 0 : index
      %47 = vector.load %arg8[%c0_31, %c0_32] : memref<16x1xf32, #tpu.memory_space<vmem>>, vector<16x1xf32>
      tpu.vector_store %arg8[%c0_31, %c0_32], %46 {strides = array<i32>} : memref<16x1xf32, #tpu.memory_space<vmem>>, vector<16x1xf32>,
      %cst_33 = arith.constant 0.000000e+00 : f32
      %48 = vector.broadcast %cst_33 : f32 to vector<16x4xf32>
      %c0_34 = arith.constant 0 : index
      %c0_35 = arith.constant 0 : index
      %49 = vector.load %arg9[%c0_34, %c0_35] : memref<16x4xf32, #tpu.memory_space<vmem>>, vector<16x4xf32>
      tpu.vector_store %arg9[%c0_34, %c0_35], %48 {strides = array<i32>} : memref<16x4xf32, #tpu.memory_space<vmem>>, vector<16x4xf32>,
    } else {
    }
    %c0 = arith.constant 0 : index
    %c0_1 = arith.constant 0 : index
    %c0_2 = arith.constant 0 : index
    %3 = vector.load %arg3[%c0, %c0_1, %c0_2] : memref<1x16x4xbf16, #tpu.memory_space<vmem>>, vector<1x16x4xbf16>
    %4 = vector.shape_cast %3 : vector<1x16x4xbf16> to vector<16x4xbf16>
    %c0_3 = arith.constant 0 : index
    %c0_4 = arith.constant 0 : index
    %c0_5 = arith.constant 0 : index
    %5 = vector.load %arg4[%c0_3, %c0_4, %c0_5] : memref<1x16x4xbf16, #tpu.memory_space<vmem>>, vector<1x16x4xbf16>
    %6 = vector.shape_cast %5 : vector<1x16x4xbf16> to vector<16x4xbf16>
    %c0_6 = arith.constant 0 : index
    %c0_7 = arith.constant 0 : index
    %c0_8 = arith.constant 0 : index
    %7 = vector.load %arg5[%c0_6, %c0_7, %c0_8] : memref<1x16x4xbf16, #tpu.memory_space<vmem>>, vector<1x16x4xbf16>
    %8 = vector.shape_cast %7 : vector<1x16x4xbf16> to vector<16x4xbf16>
    %cst = arith.constant dense<0.000000e+00> : vector<16x16xf32>
    %9 = tpu.matmul %4, %6, %cst {dimension_numbers = #tpu.dot_dimension_numbers<[1], [1], [0], [0], [0, 0, 1, 0], [], []>} : vector<16x4xbf16>, vector<16x4xbf16>, vector<16x16xf32> -> vector<16x16xf32>
    %c16_i32 = arith.constant 16 : i32
    %10 = arith.muli %arg2, %c16_i32 : i32
    %11 = tpu.iota {dimensions = array<i32: 1>} : vector<16x16xi32>
    %12 = vector.broadcast %10 : i32 to vector<16x16xi32>
    %13 = arith.addi %12, %11 : vector<16x16xi32>
    %c9_i32 = arith.constant 9 : i32
    %14 = vector.broadcast %c9_i32 : i32 to vector<16x16xi32>
    %15 = arith.cmpi slt, %13, %14 : vector<16x16xi32>
    %cst_9 = arith.constant -1.000000e+30 : f32
    %16 = vector.broadcast %cst_9 : f32 to vector<16x16xf32>
    %17 = arith.select %15, %9, %16 : vector<16x16xi1>, vector<16x16xf32>
    %c0_10 = arith.constant 0 : index
    %c0_11 = arith.constant 0 : index
    %18 = vector.load %arg7[%c0_10, %c0_11] : memref<16x1xf32, #tpu.memory_space<vmem>>, vector<16x1xf32>
    %cst_12 = arith.constant dense<0xFF800000> : vector<16xf32>
    %19 = vector.multi_reduction <maximumf>, %17, %cst_12 [1] : vector<16x16xf32> to vector<16xf32>
    %20 = vector.shape_cast %19 : vector<16xf32> to vector<16x1xf32>
    %21 = arith.maximumf %18, %20 : vector<16x1xf32>
    %22 = arith.subf %18, %21 : vector<16x1xf32>
    %23 = math.exp %22 : vector<16x1xf32>
    %24 = vector.broadcast %21 : vector<16x1xf32> to vector<16x16xf32>
    %25 = arith.subf %17, %24 : vector<16x16xf32>
    %26 = math.exp %25 : vector<16x16xf32>
    %c0_13 = arith.constant 0 : index
    %c0_14 = arith.constant 0 : index
    %27 = vector.load %arg8[%c0_13, %c0_14] : memref<16x1xf32, #tpu.memory_space<vmem>>, vector<16x1xf32>
    %28 = arith.mulf %23, %27 : vector<16x1xf32>
    %cst_15 = arith.constant dense<0.000000e+00> : vector<16xf32>
    %29 = vector.multi_reduction <add>, %26, %cst_15 [1] : vector<16x16xf32> to vector<16xf32>
    %30 = vector.shape_cast %29 : vector<16xf32> to vector<16x1xf32>
    %31 = arith.addf %28, %30 : vector<16x1xf32>
    %c0_16 = arith.constant 0 : index
    %c0_17 = arith.constant 0 : index
    %32 = vector.load %arg8[%c0_16, %c0_17] : memref<16x1xf32, #tpu.memory_space<vmem>>, vector<16x1xf32>
    tpu.vector_store %arg8[%c0_16, %c0_17], %31 {strides = array<i32>} : memref<16x1xf32, #tpu.memory_space<vmem>>, vector<16x1xf32>,
    %c0_18 = arith.constant 0 : index
    %c0_19 = arith.constant 0 : index
    %33 = vector.load %arg9[%c0_18, %c0_19] : memref<16x4xf32, #tpu.memory_space<vmem>>, vector<16x4xf32>
    %34 = vector.broadcast %23 : vector<16x1xf32> to vector<16x4xf32>
    %35 = arith.mulf %34, %33 : vector<16x4xf32>
    %36 = arith.truncf %26 : vector<16x16xf32> to vector<16x16xbf16>
    %cst_20 = arith.constant dense<0.000000e+00> : vector<16x4xf32>
    %37 = tpu.matmul %36, %8, %cst_20 {dimension_numbers = #tpu.dot_dimension_numbers<[1], [0], [0], [1], [0, 0, 1, 1], [], []>} : vector<16x16xbf16>, vector<16x4xbf16>, vector<16x4xf32> -> vector<16x4xf32>
    %38 = arith.addf %35, %37 : vector<16x4xf32>
    %c0_21 = arith.constant 0 : index
    %c0_22 = arith.constant 0 : index
    %39 = vector.load %arg9[%c0_21, %c0_22] : memref<16x4xf32, #tpu.memory_space<vmem>>, vector<16x4xf32>
    tpu.vector_store %arg9[%c0_21, %c0_22], %38 {strides = array<i32>} : memref<16x4xf32, #tpu.memory_space<vmem>>, vector<16x4xf32>,
    %c0_23 = arith.constant 0 : index
    %c0_24 = arith.constant 0 : index
    %40 = vector.load %arg7[%c0_23, %c0_24] : memref<16x1xf32, #tpu.memory_space<vmem>>, vector<16x1xf32>
    tpu.vector_store %arg7[%c0_23, %c0_24], %21 {strides = array<i32>} : memref<16x1xf32, #tpu.memory_space<vmem>>, vector<16x1xf32>,
    %c0_i32_25 = arith.constant 0 : i32
    %41 = arith.cmpi eq, %arg2, %c0_i32_25 : i32
    %42 = arith.extui %41 : i1 to i32
    %c0_i32_26 = arith.constant 0 : i32
    %43 = arith.cmpi ne, %42, %c0_i32_26 : i32
    scf.if %43 {
      %c0_27 = arith.constant 0 : index
      %c0_28 = arith.constant 0 : index
      %44 = vector.load %arg9[%c0_27, %c0_28] : memref<16x4xf32, #tpu.memory_space<vmem>>, vector<16x4xf32>
      %c0_29 = arith.constant 0 : index
      %c0_30 = arith.constant 0 : index
      %45 = vector.load %arg8[%c0_29, %c0_30] : memref<16x1xf32, #tpu.memory_space<vmem>>, vector<16x1xf32>
      %46 = tpu.reciprocal %45 {approx = true} : vector<16x1xf32> -> vector<16x1xf32>
      %47 = vector.broadcast %46 : vector<16x1xf32> to vector<16x4xf32>
      %48 = arith.mulf %44, %47 : vector<16x4xf32>
      %49 = arith.truncf %48 : vector<16x4xf32> to vector<16x4xbf16>
      %c0_31 = arith.constant 0 : index
      %c0_32 = arith.constant 0 : index
      %c0_33 = arith.constant 0 : index
      %50 = vector.load %arg6[%c0_31, %c0_32, %c0_33] : memref<1x16x4xbf16, #tpu.memory_space<vmem>>, vector<1x16x4xbf16>
      %51 = vector.shape_cast %50 : vector<1x16x4xbf16> to vector<16x4xbf16>
      %52 = vector.shape_cast %49 : vector<16x4xbf16> to vector<1x16x4xbf16>
      tpu.vector_store %arg6[%c0_31, %c0_32, %c0_33], %52 {strides = array<i32>} : memref<1x16x4xbf16, #tpu.memory_space<vmem>>, vector<1x16x4xbf16>,
    } else {
    }
    return
  }
  func.func @transform_0(%arg0: i32, %arg1: i32, %arg2: i32) -> (i32, i32, i32) {
    %c0_i32 = arith.constant 0 : i32
    %c0_i32_0 = arith.constant 0 : i32
    return %arg0, %arg1, %c0_i32 : i32, i32, i32
  }
  func.func @transform_1(%arg0: i32, %arg1: i32, %arg2: i32) -> (i32, i32, i32) {
    %c0_i32 = arith.constant 0 : i32
    %c0_i32_0 = arith.constant 0 : i32
    return %arg0, %arg2, %c0_i32 : i32, i32, i32
  }
  func.func @transform_2(%arg0: i32, %arg1: i32, %arg2: i32) -> (i32, i32, i32) {
    %c0_i32 = arith.constant 0 : i32
    %c0_i32_0 = arith.constant 0 : i32
    return %arg0, %arg2, %c0_i32 : i32, i32, i32
  }
  func.func @transform_3(%arg0: i32, %arg1: i32, %arg2: i32) -> (i32, i32, i32) {
    %c0_i32 = arith.constant 0 : i32
    %c0_i32_0 = arith.constant 0 : i32
    return %arg0, %arg1, %c0_i32 : i32, i32, i32
  }
}

module attributes {stable_mosaic.version = 11 : i64} {
  func.func @_linear_res_ln_kernel(%arg0: i32, %arg1: i32, %arg2: memref<24x32xbf16, #tpu.memory_space<vmem>>, %arg3: memref<32x32xbf16, #tpu.memory_space<vmem>>, %arg4: memref<1x32xf32, #tpu.memory_space<vmem>>, %arg5: memref<24x32xbf16, #tpu.memory_space<vmem>>, %arg6: memref<1x32xf32, #tpu.memory_space<vmem>>, %arg7: memref<1x32xf32, #tpu.memory_space<vmem>>, %arg8: memref<24x32xbf16, #tpu.memory_space<vmem>>, %arg9: memref<24x32xf32, #tpu.memory_space<vmem>>) attributes {dimension_semantics = [#tpu.dimension_semantics<parallel>, #tpu.dimension_semantics<arbitrary>], iteration_bounds = array<i64: 1, 1>, scalar_prefetch = 0 : i64, scratch_operands = 1 : i64, tpu.core_type = #tpu.core_type<tc>, window_params = [{transform_indices = @transform_0, window_bounds = array<i64: 24, 32>}, {transform_indices = @transform_1, window_bounds = array<i64: 32, 32>}, {pipeline_mode = #tpu.pipeline_mode<synchronous>, transform_indices = @transform_2, window_bounds = array<i64: 1, 32>}, {transform_indices = @transform_3, window_bounds = array<i64: 24, 32>}, {pipeline_mode = #tpu.pipeline_mode<synchronous>, transform_indices = @transform_4, window_bounds = array<i64: 1, 32>}, {pipeline_mode = #tpu.pipeline_mode<synchronous>, transform_indices = @transform_5, window_bounds = array<i64: 1, 32>}, {transform_indices = @transform_6, window_bounds = array<i64: 24, 32>}]} {
    %c0_i32 = arith.constant 0 : i32
    %0 = arith.cmpi eq, %arg1, %c0_i32 : i32
    %1 = arith.extui %0 : i1 to i32
    %c0_i32_0 = arith.constant 0 : i32
    %2 = arith.cmpi ne, %1, %c0_i32_0 : i32
    scf.if %2 {
      %cst_10 = arith.constant 0.000000e+00 : f32
      %12 = vector.broadcast %cst_10 : f32 to vector<24x32xf32>
      %c0_11 = arith.constant 0 : index
      %c0_12 = arith.constant 0 : index
      %13 = vector.load %arg9[%c0_11, %c0_12] : memref<24x32xf32, #tpu.memory_space<vmem>>, vector<24x32xf32>
      tpu.vector_store %arg9[%c0_11, %c0_12], %12 {strides = array<i32>} : memref<24x32xf32, #tpu.memory_space<vmem>>, vector<24x32xf32>,
    } else {
    }
    %c0 = arith.constant 0 : index
    %c0_1 = arith.constant 0 : index
    %3 = vector.load %arg9[%c0, %c0_1] : memref<24x32xf32, #tpu.memory_space<vmem>>, vector<24x32xf32>
    %c0_2 = arith.constant 0 : index
    %c0_3 = arith.constant 0 : index
    %4 = vector.load %arg2[%c0_2, %c0_3] : memref<24x32xbf16, #tpu.memory_space<vmem>>, vector<24x32xbf16>
    %c0_4 = arith.constant 0 : index
    %c0_5 = arith.constant 0 : index
    %5 = vector.load %arg3[%c0_4, %c0_5] : memref<32x32xbf16, #tpu.memory_space<vmem>>, vector<32x32xbf16>
    %cst = arith.constant dense<0.000000e+00> : vector<24x32xf32>
    %6 = tpu.matmul %4, %5, %cst {dimension_numbers = #tpu.dot_dimension_numbers<[1], [0], [0], [1], [0, 0, 1, 1], [], []>} : vector<24x32xbf16>, vector<32x32xbf16>, vector<24x32xf32> -> vector<24x32xf32>
    %7 = arith.addf %3, %6 : vector<24x32xf32>
    %c0_6 = arith.constant 0 : index
    %c0_7 = arith.constant 0 : index
    %8 = vector.load %arg9[%c0_6, %c0_7] : memref<24x32xf32, #tpu.memory_space<vmem>>, vector<24x32xf32>
    tpu.vector_store %arg9[%c0_6, %c0_7], %7 {strides = array<i32>} : memref<24x32xf32, #tpu.memory_space<vmem>>, vector<24x32xf32>,
    %c0_i32_8 = arith.constant 0 : i32
    %9 = arith.cmpi eq, %arg1, %c0_i32_8 : i32
    %10 = arith.extui %9 : i1 to i32
    %c0_i32_9 = arith.constant 0 : i32
    %11 = arith.cmpi ne, %10, %c0_i32_9 : i32
    scf.if %11 {
      %c0_10 = arith.constant 0 : index
      %c0_11 = arith.constant 0 : index
      %12 = vector.load %arg9[%c0_10, %c0_11] : memref<24x32xf32, #tpu.memory_space<vmem>>, vector<24x32xf32>
      %c0_12 = arith.constant 0 : index
      %c0_13 = arith.constant 0 : index
      %13 = vector.load %arg4[%c0_12, %c0_13] : memref<1x32xf32, #tpu.memory_space<vmem>>, vector<1x32xf32>
      %14 = vector.broadcast %13 : vector<1x32xf32> to vector<24x32xf32>
      %15 = arith.addf %12, %14 : vector<24x32xf32>
      %c0_14 = arith.constant 0 : index
      %c0_15 = arith.constant 0 : index
      %16 = vector.load %arg5[%c0_14, %c0_15] : memref<24x32xbf16, #tpu.memory_space<vmem>>, vector<24x32xbf16>
      %17 = arith.extf %16 : vector<24x32xbf16> to vector<24x32xf32>
      %18 = arith.addf %15, %17 : vector<24x32xf32>
      %cst_16 = arith.constant dense<0.000000e+00> : vector<24xf32>
      %19 = vector.multi_reduction <add>, %18, %cst_16 [1] : vector<24x32xf32> to vector<24xf32>
      %20 = vector.shape_cast %19 : vector<24xf32> to vector<24x1xf32>
      %cst_17 = arith.constant 3.200000e+01 : f32
      %21 = vector.broadcast %cst_17 : f32 to vector<24x1xf32>
      %22 = arith.divf %20, %21 : vector<24x1xf32>
      %23 = vector.broadcast %22 : vector<24x1xf32> to vector<24x32xf32>
      %24 = arith.subf %18, %23 : vector<24x32xf32>
      %25 = arith.mulf %24, %24 : vector<24x32xf32>
      %cst_18 = arith.constant dense<0.000000e+00> : vector<24xf32>
      %26 = vector.multi_reduction <add>, %25, %cst_18 [1] : vector<24x32xf32> to vector<24xf32>
      %27 = vector.shape_cast %26 : vector<24xf32> to vector<24x1xf32>
      %cst_19 = arith.constant 3.200000e+01 : f32
      %28 = vector.broadcast %cst_19 : f32 to vector<24x1xf32>
      %29 = arith.divf %27, %28 : vector<24x1xf32>
      %cst_20 = arith.constant 9.99999974E-6 : f32
      %30 = vector.broadcast %cst_20 : f32 to vector<24x1xf32>
      %31 = arith.addf %29, %30 : vector<24x1xf32>
      %32 = math.rsqrt %31 : vector<24x1xf32>
      %33 = vector.broadcast %32 : vector<24x1xf32> to vector<24x32xf32>
      %34 = arith.mulf %24, %33 : vector<24x32xf32>
      %c0_21 = arith.constant 0 : index
      %c0_22 = arith.constant 0 : index
      %35 = vector.load %arg6[%c0_21, %c0_22] : memref<1x32xf32, #tpu.memory_space<vmem>>, vector<1x32xf32>
      %36 = vector.broadcast %35 : vector<1x32xf32> to vector<24x32xf32>
      %37 = arith.mulf %34, %36 : vector<24x32xf32>
      %c0_23 = arith.constant 0 : index
      %c0_24 = arith.constant 0 : index
      %38 = vector.load %arg7[%c0_23, %c0_24] : memref<1x32xf32, #tpu.memory_space<vmem>>, vector<1x32xf32>
      %39 = vector.broadcast %38 : vector<1x32xf32> to vector<24x32xf32>
      %40 = arith.addf %37, %39 : vector<24x32xf32>
      %41 = arith.truncf %40 : vector<24x32xf32> to vector<24x32xbf16>
      %c0_25 = arith.constant 0 : index
      %c0_26 = arith.constant 0 : index
      %42 = vector.load %arg8[%c0_25, %c0_26] : memref<24x32xbf16, #tpu.memory_space<vmem>>, vector<24x32xbf16>
      tpu.vector_store %arg8[%c0_25, %c0_26], %41 {strides = array<i32>} : memref<24x32xbf16, #tpu.memory_space<vmem>>, vector<24x32xbf16>,
    } else {
    }
    return
  }
  func.func @transform_0(%arg0: i32, %arg1: i32) -> (i32, i32) {
    %c0_i32 = arith.constant 0 : i32
    return %arg0, %arg1 : i32, i32
  }
  func.func @transform_1(%arg0: i32, %arg1: i32) -> (i32, i32) {
    %c0_i32 = arith.constant 0 : i32
    %c0_i32_0 = arith.constant 0 : i32
    return %arg1, %c0_i32 : i32, i32
  }
  func.func @transform_2(%arg0: i32, %arg1: i32) -> (i32, i32) {
    %c0_i32 = arith.constant 0 : i32
    %c0_i32_0 = arith.constant 0 : i32
    %c0_i32_1 = arith.constant 0 : i32
    return %c0_i32, %c0_i32_0 : i32, i32
  }
  func.func @transform_3(%arg0: i32, %arg1: i32) -> (i32, i32) {
    %c0_i32 = arith.constant 0 : i32
    %c0_i32_0 = arith.constant 0 : i32
    return %arg0, %c0_i32 : i32, i32
  }
  func.func @transform_4(%arg0: i32, %arg1: i32) -> (i32, i32) {
    %c0_i32 = arith.constant 0 : i32
    %c0_i32_0 = arith.constant 0 : i32
    %c0_i32_1 = arith.constant 0 : i32
    return %c0_i32, %c0_i32_0 : i32, i32
  }
  func.func @transform_5(%arg0: i32, %arg1: i32) -> (i32, i32) {
    %c0_i32 = arith.constant 0 : i32
    %c0_i32_0 = arith.constant 0 : i32
    %c0_i32_1 = arith.constant 0 : i32
    return %c0_i32, %c0_i32_0 : i32, i32
  }
  func.func @transform_6(%arg0: i32, %arg1: i32) -> (i32, i32) {
    %c0_i32 = arith.constant 0 : i32
    %c0_i32_0 = arith.constant 0 : i32
    return %arg0, %c0_i32 : i32, i32
  }
}

module attributes {stable_mosaic.version = 11 : i64} {
  func.func @_linear_kernel(%arg0: i32, %arg1: i32, %arg2: i32, %arg3: memref<24x32xbf16, #tpu.memory_space<vmem>>, %arg4: memref<32x128xbf16, #tpu.memory_space<vmem>>, %arg5: memref<1x128xf32, #tpu.memory_space<vmem>>, %arg6: memref<24x128xbf16, #tpu.memory_space<vmem>>, %arg7: memref<24x128xf32, #tpu.memory_space<vmem>>) attributes {dimension_semantics = [#tpu.dimension_semantics<parallel>, #tpu.dimension_semantics<parallel>, #tpu.dimension_semantics<arbitrary>], iteration_bounds = array<i64: 1, 1, 1>, scalar_prefetch = 0 : i64, scratch_operands = 1 : i64, tpu.core_type = #tpu.core_type<tc>, window_params = [{transform_indices = @transform_0, window_bounds = array<i64: 24, 32>}, {transform_indices = @transform_1, window_bounds = array<i64: 32, 128>}, {transform_indices = @transform_2, window_bounds = array<i64: 1, 128>}, {transform_indices = @transform_3, window_bounds = array<i64: 24, 128>}]} {
    %c0_i32 = arith.constant 0 : i32
    %0 = arith.cmpi eq, %arg2, %c0_i32 : i32
    %1 = arith.extui %0 : i1 to i32
    %c0_i32_0 = arith.constant 0 : i32
    %2 = arith.cmpi ne, %1, %c0_i32_0 : i32
    scf.if %2 {
      %cst_10 = arith.constant 0.000000e+00 : f32
      %12 = vector.broadcast %cst_10 : f32 to vector<24x128xf32>
      %c0_11 = arith.constant 0 : index
      %c0_12 = arith.constant 0 : index
      %13 = vector.load %arg7[%c0_11, %c0_12] : memref<24x128xf32, #tpu.memory_space<vmem>>, vector<24x128xf32>
      tpu.vector_store %arg7[%c0_11, %c0_12], %12 {strides = array<i32>} : memref<24x128xf32, #tpu.memory_space<vmem>>, vector<24x128xf32>,
    } else {
    }
    %c0 = arith.constant 0 : index
    %c0_1 = arith.constant 0 : index
    %3 = vector.load %arg7[%c0, %c0_1] : memref<24x128xf32, #tpu.memory_space<vmem>>, vector<24x128xf32>
    %c0_2 = arith.constant 0 : index
    %c0_3 = arith.constant 0 : index
    %4 = vector.load %arg3[%c0_2, %c0_3] : memref<24x32xbf16, #tpu.memory_space<vmem>>, vector<24x32xbf16>
    %c0_4 = arith.constant 0 : index
    %c0_5 = arith.constant 0 : index
    %5 = vector.load %arg4[%c0_4, %c0_5] : memref<32x128xbf16, #tpu.memory_space<vmem>>, vector<32x128xbf16>
    %cst = arith.constant dense<0.000000e+00> : vector<24x128xf32>
    %6 = tpu.matmul %4, %5, %cst {dimension_numbers = #tpu.dot_dimension_numbers<[1], [0], [0], [1], [0, 0, 1, 1], [], []>} : vector<24x32xbf16>, vector<32x128xbf16>, vector<24x128xf32> -> vector<24x128xf32>
    %7 = arith.addf %3, %6 : vector<24x128xf32>
    %c0_6 = arith.constant 0 : index
    %c0_7 = arith.constant 0 : index
    %8 = vector.load %arg7[%c0_6, %c0_7] : memref<24x128xf32, #tpu.memory_space<vmem>>, vector<24x128xf32>
    tpu.vector_store %arg7[%c0_6, %c0_7], %7 {strides = array<i32>} : memref<24x128xf32, #tpu.memory_space<vmem>>, vector<24x128xf32>,
    %c0_i32_8 = arith.constant 0 : i32
    %9 = arith.cmpi eq, %arg2, %c0_i32_8 : i32
    %10 = arith.extui %9 : i1 to i32
    %c0_i32_9 = arith.constant 0 : i32
    %11 = arith.cmpi ne, %10, %c0_i32_9 : i32
    scf.if %11 {
      %c0_10 = arith.constant 0 : index
      %c0_11 = arith.constant 0 : index
      %12 = vector.load %arg7[%c0_10, %c0_11] : memref<24x128xf32, #tpu.memory_space<vmem>>, vector<24x128xf32>
      %c0_12 = arith.constant 0 : index
      %c0_13 = arith.constant 0 : index
      %13 = vector.load %arg5[%c0_12, %c0_13] : memref<1x128xf32, #tpu.memory_space<vmem>>, vector<1x128xf32>
      %14 = vector.broadcast %13 : vector<1x128xf32> to vector<24x128xf32>
      %15 = arith.addf %12, %14 : vector<24x128xf32>
      %cst_14 = arith.constant 5.000000e-01 : f32
      %16 = vector.broadcast %cst_14 : f32 to vector<24x128xf32>
      %17 = arith.mulf %16, %15 : vector<24x128xf32>
      %cst_15 = arith.constant 4.471500e-02 : f32
      %18 = vector.broadcast %cst_15 : f32 to vector<24x128xf32>
      %19 = arith.mulf %18, %15 : vector<24x128xf32>
      %20 = arith.mulf %19, %15 : vector<24x128xf32>
      %21 = arith.mulf %20, %15 : vector<24x128xf32>
      %22 = arith.addf %15, %21 : vector<24x128xf32>
      %cst_16 = arith.constant 0.797884583 : f32
      %23 = vector.broadcast %cst_16 : f32 to vector<24x128xf32>
      %24 = arith.mulf %23, %22 : vector<24x128xf32>
      %25 = math.tanh %24 : vector<24x128xf32>
      %cst_17 = arith.constant 1.000000e+00 : f32
      %26 = vector.broadcast %cst_17 : f32 to vector<24x128xf32>
      %27 = arith.addf %26, %25 : vector<24x128xf32>
      %28 = arith.mulf %17, %27 : vector<24x128xf32>
      %29 = arith.truncf %28 : vector<24x128xf32> to vector<24x128xbf16>
      %c0_18 = arith.constant 0 : index
      %c0_19 = arith.constant 0 : index
      %30 = vector.load %arg6[%c0_18, %c0_19] : memref<24x128xbf16, #tpu.memory_space<vmem>>, vector<24x128xbf16>
      tpu.vector_store %arg6[%c0_18, %c0_19], %29 {strides = array<i32>} : memref<24x128xbf16, #tpu.memory_space<vmem>>, vector<24x128xbf16>,
    } else {
    }
    return
  }
  func.func @transform_0(%arg0: i32, %arg1: i32, %arg2: i32) -> (i32, i32) {
    %c0_i32 = arith.constant 0 : i32
    return %arg0, %arg2 : i32, i32
  }
  func.func @transform_1(%arg0: i32, %arg1: i32, %arg2: i32) -> (i32, i32) {
    %c0_i32 = arith.constant 0 : i32
    return %arg2, %arg1 : i32, i32
  }
  func.func @transform_2(%arg0: i32, %arg1: i32, %arg2: i32) -> (i32, i32) {
    %c0_i32 = arith.constant 0 : i32
    %c0_i32_0 = arith.constant 0 : i32
    return %c0_i32, %arg1 : i32, i32
  }
  func.func @transform_3(%arg0: i32, %arg1: i32, %arg2: i32) -> (i32, i32) {
    %c0_i32 = arith.constant 0 : i32
    return %arg0, %arg1 : i32, i32
  }
}

module attributes {stable_mosaic.version = 11 : i64} {
  func.func @_linear_res_ln_kernel(%arg0: i32, %arg1: i32, %arg2: memref<24x128xbf16, #tpu.memory_space<vmem>>, %arg3: memref<128x32xbf16, #tpu.memory_space<vmem>>, %arg4: memref<1x32xf32, #tpu.memory_space<vmem>>, %arg5: memref<24x32xbf16, #tpu.memory_space<vmem>>, %arg6: memref<1x32xf32, #tpu.memory_space<vmem>>, %arg7: memref<1x32xf32, #tpu.memory_space<vmem>>, %arg8: memref<24x32xbf16, #tpu.memory_space<vmem>>, %arg9: memref<24x32xf32, #tpu.memory_space<vmem>>) attributes {dimension_semantics = [#tpu.dimension_semantics<parallel>, #tpu.dimension_semantics<arbitrary>], iteration_bounds = array<i64: 1, 1>, scalar_prefetch = 0 : i64, scratch_operands = 1 : i64, tpu.core_type = #tpu.core_type<tc>, window_params = [{transform_indices = @transform_0, window_bounds = array<i64: 24, 128>}, {transform_indices = @transform_1, window_bounds = array<i64: 128, 32>}, {pipeline_mode = #tpu.pipeline_mode<synchronous>, transform_indices = @transform_2, window_bounds = array<i64: 1, 32>}, {transform_indices = @transform_3, window_bounds = array<i64: 24, 32>}, {pipeline_mode = #tpu.pipeline_mode<synchronous>, transform_indices = @transform_4, window_bounds = array<i64: 1, 32>}, {pipeline_mode = #tpu.pipeline_mode<synchronous>, transform_indices = @transform_5, window_bounds = array<i64: 1, 32>}, {transform_indices = @transform_6, window_bounds = array<i64: 24, 32>}]} {
    %c0_i32 = arith.constant 0 : i32
    %0 = arith.cmpi eq, %arg1, %c0_i32 : i32
    %1 = arith.extui %0 : i1 to i32
    %c0_i32_0 = arith.constant 0 : i32
    %2 = arith.cmpi ne, %1, %c0_i32_0 : i32
    scf.if %2 {
      %cst_10 = arith.constant 0.000000e+00 : f32
      %12 = vector.broadcast %cst_10 : f32 to vector<24x32xf32>
      %c0_11 = arith.constant 0 : index
      %c0_12 = arith.constant 0 : index
      %13 = vector.load %arg9[%c0_11, %c0_12] : memref<24x32xf32, #tpu.memory_space<vmem>>, vector<24x32xf32>
      tpu.vector_store %arg9[%c0_11, %c0_12], %12 {strides = array<i32>} : memref<24x32xf32, #tpu.memory_space<vmem>>, vector<24x32xf32>,
    } else {
    }
    %c0 = arith.constant 0 : index
    %c0_1 = arith.constant 0 : index
    %3 = vector.load %arg9[%c0, %c0_1] : memref<24x32xf32, #tpu.memory_space<vmem>>, vector<24x32xf32>
    %c0_2 = arith.constant 0 : index
    %c0_3 = arith.constant 0 : index
    %4 = vector.load %arg2[%c0_2, %c0_3] : memref<24x128xbf16, #tpu.memory_space<vmem>>, vector<24x128xbf16>
    %c0_4 = arith.constant 0 : index
    %c0_5 = arith.constant 0 : index
    %5 = vector.load %arg3[%c0_4, %c0_5] : memref<128x32xbf16, #tpu.memory_space<vmem>>, vector<128x32xbf16>
    %cst = arith.constant dense<0.000000e+00> : vector<24x32xf32>
    %6 = tpu.matmul %4, %5, %cst {dimension_numbers = #tpu.dot_dimension_numbers<[1], [0], [0], [1], [0, 0, 1, 1], [], []>} : vector<24x128xbf16>, vector<128x32xbf16>, vector<24x32xf32> -> vector<24x32xf32>
    %7 = arith.addf %3, %6 : vector<24x32xf32>
    %c0_6 = arith.constant 0 : index
    %c0_7 = arith.constant 0 : index
    %8 = vector.load %arg9[%c0_6, %c0_7] : memref<24x32xf32, #tpu.memory_space<vmem>>, vector<24x32xf32>
    tpu.vector_store %arg9[%c0_6, %c0_7], %7 {strides = array<i32>} : memref<24x32xf32, #tpu.memory_space<vmem>>, vector<24x32xf32>,
    %c0_i32_8 = arith.constant 0 : i32
    %9 = arith.cmpi eq, %arg1, %c0_i32_8 : i32
    %10 = arith.extui %9 : i1 to i32
    %c0_i32_9 = arith.constant 0 : i32
    %11 = arith.cmpi ne, %10, %c0_i32_9 : i32
    scf.if %11 {
      %c0_10 = arith.constant 0 : index
      %c0_11 = arith.constant 0 : index
      %12 = vector.load %arg9[%c0_10, %c0_11] : memref<24x32xf32, #tpu.memory_space<vmem>>, vector<24x32xf32>
      %c0_12 = arith.constant 0 : index
      %c0_13 = arith.constant 0 : index
      %13 = vector.load %arg4[%c0_12, %c0_13] : memref<1x32xf32, #tpu.memory_space<vmem>>, vector<1x32xf32>
      %14 = vector.broadcast %13 : vector<1x32xf32> to vector<24x32xf32>
      %15 = arith.addf %12, %14 : vector<24x32xf32>
      %c0_14 = arith.constant 0 : index
      %c0_15 = arith.constant 0 : index
      %16 = vector.load %arg5[%c0_14, %c0_15] : memref<24x32xbf16, #tpu.memory_space<vmem>>, vector<24x32xbf16>
      %17 = arith.extf %16 : vector<24x32xbf16> to vector<24x32xf32>
      %18 = arith.addf %15, %17 : vector<24x32xf32>
      %cst_16 = arith.constant dense<0.000000e+00> : vector<24xf32>
      %19 = vector.multi_reduction <add>, %18, %cst_16 [1] : vector<24x32xf32> to vector<24xf32>
      %20 = vector.shape_cast %19 : vector<24xf32> to vector<24x1xf32>
      %cst_17 = arith.constant 3.200000e+01 : f32
      %21 = vector.broadcast %cst_17 : f32 to vector<24x1xf32>
      %22 = arith.divf %20, %21 : vector<24x1xf32>
      %23 = vector.broadcast %22 : vector<24x1xf32> to vector<24x32xf32>
      %24 = arith.subf %18, %23 : vector<24x32xf32>
      %25 = arith.mulf %24, %24 : vector<24x32xf32>
      %cst_18 = arith.constant dense<0.000000e+00> : vector<24xf32>
      %26 = vector.multi_reduction <add>, %25, %cst_18 [1] : vector<24x32xf32> to vector<24xf32>
      %27 = vector.shape_cast %26 : vector<24xf32> to vector<24x1xf32>
      %cst_19 = arith.constant 3.200000e+01 : f32
      %28 = vector.broadcast %cst_19 : f32 to vector<24x1xf32>
      %29 = arith.divf %27, %28 : vector<24x1xf32>
      %cst_20 = arith.constant 9.99999974E-6 : f32
      %30 = vector.broadcast %cst_20 : f32 to vector<24x1xf32>
      %31 = arith.addf %29, %30 : vector<24x1xf32>
      %32 = math.rsqrt %31 : vector<24x1xf32>
      %33 = vector.broadcast %32 : vector<24x1xf32> to vector<24x32xf32>
      %34 = arith.mulf %24, %33 : vector<24x32xf32>
      %c0_21 = arith.constant 0 : index
      %c0_22 = arith.constant 0 : index
      %35 = vector.load %arg6[%c0_21, %c0_22] : memref<1x32xf32, #tpu.memory_space<vmem>>, vector<1x32xf32>
      %36 = vector.broadcast %35 : vector<1x32xf32> to vector<24x32xf32>
      %37 = arith.mulf %34, %36 : vector<24x32xf32>
      %c0_23 = arith.constant 0 : index
      %c0_24 = arith.constant 0 : index
      %38 = vector.load %arg7[%c0_23, %c0_24] : memref<1x32xf32, #tpu.memory_space<vmem>>, vector<1x32xf32>
      %39 = vector.broadcast %38 : vector<1x32xf32> to vector<24x32xf32>
      %40 = arith.addf %37, %39 : vector<24x32xf32>
      %41 = arith.truncf %40 : vector<24x32xf32> to vector<24x32xbf16>
      %c0_25 = arith.constant 0 : index
      %c0_26 = arith.constant 0 : index
      %42 = vector.load %arg8[%c0_25, %c0_26] : memref<24x32xbf16, #tpu.memory_space<vmem>>, vector<24x32xbf16>
      tpu.vector_store %arg8[%c0_25, %c0_26], %41 {strides = array<i32>} : memref<24x32xbf16, #tpu.memory_space<vmem>>, vector<24x32xbf16>,
    } else {
    }
    return
  }
  func.func @transform_0(%arg0: i32, %arg1: i32) -> (i32, i32) {
    %c0_i32 = arith.constant 0 : i32
    return %arg0, %arg1 : i32, i32
  }
  func.func @transform_1(%arg0: i32, %arg1: i32) -> (i32, i32) {
    %c0_i32 = arith.constant 0 : i32
    %c0_i32_0 = arith.constant 0 : i32
    return %arg1, %c0_i32 : i32, i32
  }
  func.func @transform_2(%arg0: i32, %arg1: i32) -> (i32, i32) {
    %c0_i32 = arith.constant 0 : i32
    %c0_i32_0 = arith.constant 0 : i32
    %c0_i32_1 = arith.constant 0 : i32
    return %c0_i32, %c0_i32_0 : i32, i32
  }
  func.func @transform_3(%arg0: i32, %arg1: i32) -> (i32, i32) {
    %c0_i32 = arith.constant 0 : i32
    %c0_i32_0 = arith.constant 0 : i32
    return %arg0, %c0_i32 : i32, i32
  }
  func.func @transform_4(%arg0: i32, %arg1: i32) -> (i32, i32) {
    %c0_i32 = arith.constant 0 : i32
    %c0_i32_0 = arith.constant 0 : i32
    %c0_i32_1 = arith.constant 0 : i32
    return %c0_i32, %c0_i32_0 : i32, i32
  }
  func.func @transform_5(%arg0: i32, %arg1: i32) -> (i32, i32) {
    %c0_i32 = arith.constant 0 : i32
    %c0_i32_0 = arith.constant 0 : i32
    %c0_i32_1 = arith.constant 0 : i32
    return %c0_i32, %c0_i32_0 : i32, i32
  }
  func.func @transform_6(%arg0: i32, %arg1: i32) -> (i32, i32) {
    %c0_i32 = arith.constant 0 : i32
    %c0_i32_0 = arith.constant 0 : i32
    return %arg0, %c0_i32 : i32, i32
  }
}

module attributes {stable_mosaic.version = 11 : i64} {
  func.func @_linear_kernel(%arg0: i32, %arg1: i32, %arg2: i32, %arg3: memref<8x32xbf16, #tpu.memory_space<vmem>>, %arg4: memref<32x1xbf16, #tpu.memory_space<vmem>>, %arg5: memref<1x1xf32, #tpu.memory_space<vmem>>, %arg6: memref<8x1xf32, #tpu.memory_space<vmem>>, %arg7: memref<8x1xf32, #tpu.memory_space<vmem>>) attributes {dimension_semantics = [#tpu.dimension_semantics<parallel>, #tpu.dimension_semantics<parallel>, #tpu.dimension_semantics<arbitrary>], iteration_bounds = array<i64: 1, 1, 1>, scalar_prefetch = 0 : i64, scratch_operands = 1 : i64, tpu.core_type = #tpu.core_type<tc>, window_params = [{transform_indices = @transform_0, window_bounds = array<i64: 8, 32>}, {transform_indices = @transform_1, window_bounds = array<i64: 32, 1>}, {transform_indices = @transform_2, window_bounds = array<i64: 1, 1>}, {transform_indices = @transform_3, window_bounds = array<i64: 8, 1>}]} {
    %c0_i32 = arith.constant 0 : i32
    %0 = arith.cmpi eq, %arg2, %c0_i32 : i32
    %1 = arith.extui %0 : i1 to i32
    %c0_i32_0 = arith.constant 0 : i32
    %2 = arith.cmpi ne, %1, %c0_i32_0 : i32
    scf.if %2 {
      %cst_10 = arith.constant 0.000000e+00 : f32
      %12 = vector.broadcast %cst_10 : f32 to vector<8x1xf32>
      %c0_11 = arith.constant 0 : index
      %c0_12 = arith.constant 0 : index
      %13 = vector.load %arg7[%c0_11, %c0_12] : memref<8x1xf32, #tpu.memory_space<vmem>>, vector<8x1xf32>
      tpu.vector_store %arg7[%c0_11, %c0_12], %12 {strides = array<i32>} : memref<8x1xf32, #tpu.memory_space<vmem>>, vector<8x1xf32>,
    } else {
    }
    %c0 = arith.constant 0 : index
    %c0_1 = arith.constant 0 : index
    %3 = vector.load %arg7[%c0, %c0_1] : memref<8x1xf32, #tpu.memory_space<vmem>>, vector<8x1xf32>
    %c0_2 = arith.constant 0 : index
    %c0_3 = arith.constant 0 : index
    %4 = vector.load %arg3[%c0_2, %c0_3] : memref<8x32xbf16, #tpu.memory_space<vmem>>, vector<8x32xbf16>
    %c0_4 = arith.constant 0 : index
    %c0_5 = arith.constant 0 : index
    %5 = vector.load %arg4[%c0_4, %c0_5] : memref<32x1xbf16, #tpu.memory_space<vmem>>, vector<32x1xbf16>
    %cst = arith.constant dense<0.000000e+00> : vector<8x1xf32>
    %6 = tpu.matmul %4, %5, %cst {dimension_numbers = #tpu.dot_dimension_numbers<[1], [0], [0], [1], [0, 0, 1, 1], [], []>} : vector<8x32xbf16>, vector<32x1xbf16>, vector<8x1xf32> -> vector<8x1xf32>
    %7 = arith.addf %3, %6 : vector<8x1xf32>
    %c0_6 = arith.constant 0 : index
    %c0_7 = arith.constant 0 : index
    %8 = vector.load %arg7[%c0_6, %c0_7] : memref<8x1xf32, #tpu.memory_space<vmem>>, vector<8x1xf32>
    tpu.vector_store %arg7[%c0_6, %c0_7], %7 {strides = array<i32>} : memref<8x1xf32, #tpu.memory_space<vmem>>, vector<8x1xf32>,
    %c0_i32_8 = arith.constant 0 : i32
    %9 = arith.cmpi eq, %arg2, %c0_i32_8 : i32
    %10 = arith.extui %9 : i1 to i32
    %c0_i32_9 = arith.constant 0 : i32
    %11 = arith.cmpi ne, %10, %c0_i32_9 : i32
    scf.if %11 {
      %c0_10 = arith.constant 0 : index
      %c0_11 = arith.constant 0 : index
      %12 = vector.load %arg7[%c0_10, %c0_11] : memref<8x1xf32, #tpu.memory_space<vmem>>, vector<8x1xf32>
      %c0_12 = arith.constant 0 : index
      %c0_13 = arith.constant 0 : index
      %13 = vector.load %arg5[%c0_12, %c0_13] : memref<1x1xf32, #tpu.memory_space<vmem>>, vector<1x1xf32>
      %14 = vector.broadcast %13 : vector<1x1xf32> to vector<8x1xf32>
      %15 = arith.addf %12, %14 : vector<8x1xf32>
      %16 = arith.negf %15 : vector<8x1xf32>
      %17 = math.exp %16 : vector<8x1xf32>
      %cst_14 = arith.constant 1.000000e+00 : f32
      %18 = vector.broadcast %cst_14 : f32 to vector<8x1xf32>
      %19 = arith.addf %18, %17 : vector<8x1xf32>
      %20 = arith.divf %18, %19 : vector<8x1xf32>
      %c0_15 = arith.constant 0 : index
      %c0_16 = arith.constant 0 : index
      %21 = vector.load %arg6[%c0_15, %c0_16] : memref<8x1xf32, #tpu.memory_space<vmem>>, vector<8x1xf32>
      tpu.vector_store %arg6[%c0_15, %c0_16], %20 {strides = array<i32>} : memref<8x1xf32, #tpu.memory_space<vmem>>, vector<8x1xf32>,
    } else {
    }
    return
  }
  func.func @transform_0(%arg0: i32, %arg1: i32, %arg2: i32) -> (i32, i32) {
    %c0_i32 = arith.constant 0 : i32
    return %arg0, %arg2 : i32, i32
  }
  func.func @transform_1(%arg0: i32, %arg1: i32, %arg2: i32) -> (i32, i32) {
    %c0_i32 = arith.constant 0 : i32
    return %arg2, %arg1 : i32, i32
  }
  func.func @transform_2(%arg0: i32, %arg1: i32, %arg2: i32) -> (i32, i32) {
    %c0_i32 = arith.constant 0 : i32
    %c0_i32_0 = arith.constant 0 : i32
    return %c0_i32, %arg1 : i32, i32
  }
  func.func @transform_3(%arg0: i32, %arg1: i32, %arg2: i32) -> (i32, i32) {
    %c0_i32 = arith.constant 0 : i32
    return %arg0, %arg1 : i32, i32
  }
}

</mosaic_0001>

<bundles_post_ra>
// kernel: timesformer_forward.32
= control target key start
LH: loop header
LB: loop body
LE: loop exit
PB: predicated region body
PF: predicated region fallthrough
CT: control target
= control target key end

     0   :  { %vm16_vm0 = vcmask 261120   ;;  %v234_v0 = vmov 0   ;;  %v235_v2 = vmov 0.0   ;;  %vm128_vm1 = vcmask 523264   ;;  %s303_s1 = inlined_call_operand.vmem [shape: bf16[192,32], index: 1, kind: input, shape index: {}]   ;;  %s304_s0 = inlined_call_operand.vmem [shape: bf16[16,192], index: 0, kind: input, shape index: {}]   ;;  %s305_s2 = inlined_call_operand.vmem [shape: bf16[16,32], index: 2, kind: output, shape index: {}]  }
   0x1   :  { %132 = vmatprep.subr.bf16.mxu0 %v234_v0  ;;  %v219_v1 = vld [vmem:[%s303_s1] sm:$0xff]   ;;  %17 = vst.msk [vmem:[#allocation2] sm:$0xff] %vm16_vm0, %v235_v2  ;;  %18 = vst.msk [vmem:[#allocation2 + $0x8] sm:$0xff] %vm16_vm0, %v235_v2  ;;  %v220_v3 = vld [vmem:[%s303_s1 + $0x8] sm:$0xff]   ;;  %vm191_vm2 = vcmask 257024  }
   0x2   :  { %133 = vmatpush1.bf16.msra.mxu0 %v219_v1  ;;  %v221_v4 = vld [vmem:[%s303_s1 + $0x10] sm:$0xff]   ;;  %v222_v5 = vld [vmem:[%s303_s1 + $0x18] sm:$0xff]   ;;  %v233_v6 = vld [vmem:[%s304_s0 + $0x4] ss:$8 sps:$4 sm:$0xff]  }
   0x3   :  { %134 = vmatprep.subr.bf16.mxu0 %v234_v0  ;;  %v223_v7 = vld [vmem:[%s303_s1 + $0x20] sm:$0xff]   ;;  %212 = vmatprep.mubr.msk.bf16.mxu0 %vm128_vm1, %v233_v6  ;;  %v224_v8 = vld [vmem:[%s303_s1 + $0x28] sm:$0xff]   ;;  %v225_v9 = vld [vmem:[%s303_s1 + $0x30] sm:$0xff]  }
   0x4   :  { %v226_v10 = vld [vmem:[%s303_s1 + $0x38] sm:$0xff]   ;;  %v227_v11 = vld [vmem:[%s303_s1 + $0x40] sm:$0xff]   ;;  %v228_v12 = vld [vmem:[%s303_s1 + $0x48] sm:$0xff]  }
   0x5   :  { %v229_v13 = vld [vmem:[%s303_s1 + $0x50] sm:$0xff]   ;;  %v230_v14 = vld [vmem:[%s303_s1 + $0x58] sm:$0xff]   ;;  %v231_v15 = vld [vmem:[%s304_s0] ss:$8 sps:$4 sm:$0xff]  }
   0x6   :  { %135 = vmatpush1.bf16.msra.mxu0 %v220_v3 }
   0x7   :  { %136 = vmatprep.subr.bf16.mxu0 %v234_v0 }
   0x8   :  { %v19_v16 = vld [vmem:[#allocation2] sm:$0xff]  ;;  %v20_v18 = vld [vmem:[#allocation2 + $0x8] sm:$0xff] }
   0xa   :  { %137 = vmatpush1.bf16.msra.mxu0 %v221_v4 }
   0xb   :  { %138 = vmatprep.subr.bf16.mxu0 %v234_v0 }
   0xe   :  { %139 = vmatpush1.bf16.msra.mxu0 %v222_v5 }
   0xf   :  { %140 = vmatprep.subr.bf16.mxu0 %v234_v0 }
  0x12   :  { %141 = vmatpush1.bf16.msra.mxu0 %v223_v7 }
  0x13   :  { %142 = vmatprep.subr.bf16.mxu0 %v234_v0 }
  0x16   :  { %143 = vmatpush1.bf16.msra.mxu0 %v224_v8 }
  0x17   :  { %144 = vmatprep.subr.bf16.mxu0 %v234_v0 }
  0x1a   :  { %145 = vmatpush1.bf16.msra.mxu0 %v225_v9 }
  0x1b   :  { %146 = vmatprep.subr.bf16.mxu0 %v234_v0 }
  0x1e   :  { %147 = vmatpush1.bf16.msra.mxu0 %v226_v10 }
  0x1f   :  { %148 = vmatprep.subr.bf16.mxu0 %v234_v0 }
  0x22   :  { %149 = vmatpush1.bf16.msra.mxu0 %v227_v11 }
  0x23   :  { %150 = vmatprep.subr.bf16.mxu0 %v234_v0 }
  0x26   :  { %151 = vmatpush1.bf16.msra.mxu0 %v228_v12 }
  0x27   :  { %152 = vmatprep.subr.bf16.mxu0 %v234_v0 }
  0x2a   :  { %153 = vmatpush1.bf16.msra.mxu0 %v229_v13 }
  0x2b   :  { %154 = vmatprep.subr.bf16.mxu0 %v234_v0 }
  0x2e   :  { %155 = vmatpush1.bf16.msra.mxu0 %v230_v14 }
  0x31   :  { %165 = vmatmul.mubr.bf16.vlgmr.msra.gmra.mrb[0].mxu0 %v231_v15 }
 0x104   :  { %v166_v17 = vpop.f32.mrb[0].mxu0 }
 0x105   :  { %v173_v19 = vadd.f32 %v166_v17, %v19_v16  ;;  %v168_v20 = vpop.f32.mrb[1].mxu0 }
 0x106   :  { %v169_v21 = vpop.f32.mrb[2].mxu0 }
 0x107   :  { %176 = vst.msk [vmem:[#allocation2] sm:$0xff] %vm16_vm0, %v173_v19  ;;  %v174_v22 = vadd.f32 %v169_v21, %v20_v18  ;;  %v171_v23 = vpop.f32.mrb[3].mxu0 }
 0x109   :  { %177 = vst.msk [vmem:[#allocation2 + $0x8] sm:$0xff] %vm16_vm0, %v174_v22 }
 0x10e   :  { %v181_v24 = vld [vmem:[#allocation2] sm:$0xff] }
 0x10f   :  { %v215_v25 = vpack.c.bf16 %v181_v24, %v181_v24 }
 0x110   :  { %v182_v26 = vld [vmem:[#allocation2 + $0x8] sm:$0xff] }
 0x111   :  { %192 = vst.msk [vmem:[%s305_s2] sm:$0xf] %vm191_vm2, %v215_v25  ;;  %v216_v27 = vpack.c.bf16 %v182_v26, %v182_v26 }
 0x113   :  { %193 = vst.msk [vmem:[%s305_s2 + $0x4] sm:$0xf] %vm191_vm2, %v216_v27 }

// kernel: timesformer_forward.33
= control target key start
LH: loop header
LB: loop body
LE: loop exit
PB: predicated region body
PF: predicated region fallthrough
CT: control target
= control target key end

     0   :  { %vm19_vm0 = vcmask 785408   ;;  %v182_v1 = vmov 0.0   ;;  %vm53_vm1 = vcmask 261120   ;;  %vm144_vm2 = vcmask 781312   ;;  %s233_s1 = inlined_call_operand.vmem [shape: bf16[32,96], index: 1, kind: input, shape index: {}]   ;;  %s234_s0 = inlined_call_operand.vmem [shape: bf16[24,32], index: 0, kind: input, shape index: {}]   ;;  %s235_s2 = inlined_call_operand.vmem [shape: f32[1,96], index: 2, kind: input, shape index: {}]   ;;  %s236_s3 = inlined_call_operand.vmem [shape: bf16[24,96], index: 3, kind: output, shape index: {}]  }
   0x1   :  { %v178_v0 = vld [vmem:[%s233_s1] sm:$0xff]   ;;  %22 = vst.msk [vmem:[#allocation2 + $0x10] sm:$0xff] %vm19_vm0, %v182_v1  ;;  %20 = vst.msk [vmem:[#allocation2] sm:$0xff] %vm19_vm0, %v182_v1  ;;  %v179_v2 = vld [vmem:[%s233_s1 + $0x8] sm:$0xff]  }
   0x2   :  { %21 = vst.msk [vmem:[#allocation2 + $0x8] sm:$0xff] %vm19_vm0, %v182_v1  ;;  %169 = vmatprep.subr.bf16.mxu0 %v178_v0  ;;  %v180_v3 = vld [vmem:[%s234_s0] sm:$0xff]   ;;  %v181_v4 = vld [vmem:[%s234_s0 + $0x8] ss:$0 sps:$4 sm:$0xff]  }
   0x3   :  { %170 = vmatpush3.bf16.msra.mxu0 %v178_v0  ;;  %173 = vmatprep.mubr.msk.bf16.mxu0 %vm53_vm1, %v180_v3  ;;  %v158_v15 = vld [vmem:[%s235_s2] ss:$0 sm:$0xff] }
   0x4   :  { %171 = vmatprep.subr.bf16.mxu0 %v179_v2 }
   0x7   :  { %172 = vmatpush3.bf16.msra.mxu0 %v179_v2 }
   0x8   :  { %v25_v5 = vld [vmem:[#allocation2 + $0x10] sm:$0xff]  ;;  %v23_v6 = vld [vmem:[#allocation2] sm:$0xff] }
   0x9   :  { %v24_v10 = vld [vmem:[#allocation2 + $0x8] sm:$0xff] }
   0xa   :  { %174 = vmatmul.mubr.msk.bf16.vlgmr.msra.gmra.mrb[0].mxu0 %vm53_vm1, %v181_v4 }
  0xdd   :  { %v175_v7 = vpop.f32.mrb[0].mxu0 }
  0xde   :  { %v110_v8 = vadd.f32 %v175_v7, %v25_v5  ;;  %v94_v9 = vpop.f32.mrb[1].mxu0 }
  0xdf   :  { %v108_v11 = vadd.f32 %v94_v9, %v23_v6  ;;  %v176_v12 = vpop.f32.mrb[2].mxu0 }
  0xe0   :  { %114 = vst.msk [vmem:[#allocation2 + $0x10] sm:$0xff] %vm19_vm0, %v110_v8  ;;  %v97_v13 = vpop.f32.mrb[3].mxu0 }
  0xe1   :  { %112 = vst.msk [vmem:[#allocation2] sm:$0xff] %vm19_vm0, %v108_v11  ;;  %v109_v14 = vadd.f32 %v97_v13, %v24_v10 }
  0xe3   :  { %113 = vst.msk [vmem:[#allocation2 + $0x8] sm:$0xff] %vm19_vm0, %v109_v14 }
  0xe7   :  { %v120_v16 = vld [vmem:[#allocation2 + $0x10] sm:$0xff] }
  0xe8   :  { %v130_v17 = vadd.f32 %v158_v15, %v120_v16  ;;  %v118_v18 = vld [vmem:[#allocation2] sm:$0xff] }
  0xe9   :  { %v128_v19 = vadd.f32 %v158_v15, %v118_v18 }
  0xea   :  { %v164_v20 = vpack.c.bf16 %v130_v17, %v130_v17  ;;  %v119_v21 = vld [vmem:[#allocation2 + $0x8] sm:$0xff] }
  0xeb   :  { %v162_v22 = vpack.c.bf16 %v128_v19, %v128_v19  ;;  %v129_v23 = vadd.f32 %v158_v15, %v119_v21 }
  0xec   :  { %147 = vst.msk [vmem:[%s236_s3 + $0x8] sm:$0xf] %vm144_vm2, %v164_v20 }
  0xed   :  { %145 = vst.msk [vmem:[%s236_s3] sm:$0xf] %vm144_vm2, %v162_v22  ;;  %v163_v24 = vpack.c.bf16 %v129_v23, %v129_v23 }
  0xef   :  { %146 = vst.msk [vmem:[%s236_s3 + $0x4] sm:$0xf] %vm144_vm2, %v163_v24 }

// kernel: timesformer_forward.34
= control target key start
LH: loop header
LB: loop body
LE: loop exit
PB: predicated region body
PF: predicated region fallthrough
CT: control target
= control target key end

     0   :  { %s788_s12 = smov 0   ;;  %s790_s13 = smov 0   ;;  %s852_s0 = inlined_call_operand.vmem [shape: bf16[16,16,4], index: 0, kind: input, shape index: {}]   ;;  %s853_s1 = inlined_call_operand.vmem [shape: bf16[16,16,4], index: 1, kind: input, shape index: {}]   ;;  %s854_s2 = inlined_call_operand.vmem [shape: bf16[16,16,4], index: 2, kind: input, shape index: {}]   ;;  %s855_s3 = inlined_call_operand.vmem [shape: bf16[16,16,4], index: 3, kind: output, shape index: {}]  }
   0x1   :  { %s792_s14 = smov 0  }
   0x2 LB: > { %s32_s15 = sadd.s32 1, %s758_s13  ;;  %p655_p0 = scmp.ge.s32.totalorder %s762_s14, 1  ;;  %s762_s14 = sphi %s792_s14, %s13_s14   ;;  %s758_s13 = sphi %s790_s13, %s857_s13   ;;  %s754_s12 = sphi %s788_s12, %s856_s12  }
   0x3   : > { %p34_p1 = scmp.ge.s32.totalorder %s32_s15, 16  ;;  %p199_p2 = scmp.lt.s32.totalorder %s762_s14, 17 }
   0x5   : > { %s859_s15 = smov (%p34_p1, %s32_s15), 0  ;;  %p200_p3 = pnand %p655_p0, %p199_p2 }
   0x6   : > { %p250_p4 = scmp.lt.s32.totalorder (!%p200_p3), %s754_s12, 15  ;;  %vm299_vm0 = vcmask (!%p200_p3), 31744   ;;  %v764_v0 = vmov (!%p200_p3), 0.0   ;;  %vm765_vm1 = vmmov (!%p200_p3), 0   ;;  %vm294_vm2 = vcmask (!%p200_p3), 7168  }
   0x7   : > { %203 = sbr.rel (%p200_p3) target bundleno = 828 (0x33c), region = 32  ;;  %683 = vmatprep.subr.bf16.mxu0 (!%p200_p3), %v764_v0  ;;  %300 = vst.msk [vmem:[#allocation4] sm:$0xff] (!%p200_p3), %vm299_vm0, %v764_v0  ;;  %301 = vst.msk [vmem:[#allocation4 + $0x8] sm:$0xff] (!%p200_p3), %vm299_vm0, %v764_v0  ;;  %685 = vmatprep.mubr.msk.bf16.mxu0 (!%p200_p3), %vm765_vm1, %v764_v0  ;;  %v766_v4 = vmov (!%p200_p3), -1e+30   ;;  %v367_v5 = vlaneseq (!%p200_p3)  ;;  %vm376_vm4 = vcmask (!%p200_p3), 130048  }
   0x8   : > { %689 = vmatprep.subr.bf16.mxu1 (!%p200_p3), %v764_v0  ;;  %691 = vmatprep.mubr.msk.bf16.mxu1 (!%p200_p3), %vm765_vm1, %v764_v0  ;;  %295 = vst.msk [vmem:[#allocation2] sm:$0xff] (!%p200_p3), %vm294_vm2, %v766_v4  ;;  %296 = vst.msk [vmem:[#allocation2 + $0x8] sm:$0xff] (!%p200_p3), %vm294_vm2, %v766_v4  ;;  %v767_v15 = vmov (!%p200_p3), 0   ;;  %vm522_vm5 = vcmask (!%p200_p3), 27648  }
   0x9   : > { %297 = vst.msk [vmem:[#allocation3] sm:$0xff] (!%p200_p3), %vm294_vm2, %v764_v0  ;;  %298 = vst.msk [vmem:[#allocation3 + $0x8] sm:$0xff] (!%p200_p3), %vm294_vm2, %v764_v0  ;;  %v368_v6 = vand.u32 (!%p200_p3), 127, %v367_v5  ;;  %723 = vset.pattern.permute.xlu1 (!%p200_p3), %v767_v15  ;;  %724 = vset.pattern.permute.xlu0 (!%p200_p3), %v767_v15 }
   0xb   : > { %vm371_vm3 = vcmp.lt.s32.totalorder (!%p200_p3), %v368_v6, 9 }
   0xe   : > { %s861_s12 = smov (!%p250_p4, %s754_s12), 15  ;;  %v422_v52 = vld [vmem:[#allocation4] sm:$0xff]  ;;  %v423_v54 = vld [vmem:[#allocation4 + $0x8] sm:$0xff] }
   0xf   : > { %s808_s16 = sshll.u32 %s861_s12, 3  ;;  %v374_v16 = vld [vmem:[#allocation2] sm:$0xff]  ;;  %v375_v19 = vld [vmem:[#allocation2 + $0x8] sm:$0xff] }
  0x10   : > { %s267_s19 = scalar_lea.vmem %s853_s1, %s808_s16  ;;  %s257_s22 = scalar_lea.vmem %s852_s0, %s808_s16  ;;  %v407_v40 = vld [vmem:[#allocation3] sm:$0xff]  ;;  %v408_v43 = vld [vmem:[#allocation3 + $0x8] sm:$0xff] }
  0x11   : > { %v725_v1 = vld [vmem:[%s267_s19] sm:$0xff]   ;;  %s277_s25 = scalar_lea.vmem %s854_s2, %s808_s16  ;;  %s287_s28 = scalar_lea.vmem %s855_s3, %s808_s16 }
  0x12   : > { %v323_v2 = vsel %vm299_vm0, %v725_v1, 0  ;;  %v726_v3 = vld [vmem:[%s257_s22] sm:$0xff]  }
  0x13   : > { %684 = vmatpush3.bf16.xpose.msra.mxu0 %v323_v2  ;;  %v727_v24 = vld [vmem:[%s277_s25] sm:$0xff]  }
  0x14   : > { %690 = vmatpush3.bf16.msra.mxu1 %v727_v24 }
  0x1a   : > { %686 = vmatmul.mubr.msk.bf16.vlgmr.msra.gmra.mrb[0].mxu0 %vm299_vm0, %v726_v3 }
  0xed   : > { %v359_v7 = vpop.f32.mrb[0].mxu0 }
  0xee   : > { %v372_v8 = vsel %vm371_vm3, %v359_v7, -1e+30  ;;  %v687_v9 = vpop.f32.mrb[1].mxu0 }
  0xef   : > { %v362_v10 = vpop.f32.mrb[2].mxu0  ;;  %v377_v11 = vsel %vm376_vm4, %v372_v8, -inf }
  0xf0   : > { %v373_v12 = vsel %vm371_vm3, %v362_v10, -1e+30  ;;  %378 = vmax.xlane.f32.xlu0 %v377_v11  ;;  %v688_v13 = vpop.f32.mrb[3].mxu0 }
  0xf1   : > { %v380_v14 = vsel %vm376_vm4, %v373_v12, -inf }
  0xf4   : > { %381 = vmax.xlane.f32.xlu0 %v380_v14 }
 0x17d   : > { %v379_v17 = vpop.xlane.xlu0 %378 }
 0x17e   : > { %v383_v18 = vmax.f32 %v374_v16, %v379_v17 }
 0x180   : > { %v385_v20 = vsub.f32 %v374_v16, %v383_v18  ;;  %491 = vst.msk [vmem:[#allocation2] sm:$0xff] %vm294_vm2, %v383_v18  ;;  %393 = vperm.xlu1 %723, %v383_v18  }
 0x181   : > { %v382_v21 = vpop.xlane.xlu0 %381 }
 0x182   : > { %v384_v22 = vmax.f32 %v375_v19, %v382_v21  ;;  %v387_v37 = vmul.f32 1.442695, %v385_v20 }
 0x184   : > { %v386_v23 = vsub.f32 %v375_v19, %v384_v22  ;;  %492 = vst.msk [vmem:[#allocation2 + $0x8] sm:$0xff] %vm294_vm2, %v384_v22  ;;  %398 = vperm.xlu1 %723, %v384_v22  }
 0x186   : > { %v389_v36 = vmul.f32 1.442695, %v386_v23 }
 0x1ff   : > { %v394_v25 = vpop.permute.xlu1 %393 }
 0x200   : > { %v401_v26 = vsub.f32 %v372_v8, %v394_v25 }
 0x202   : > { %v403_v27 = vmul.f32 1.442695, %v401_v26 }
 0x203   : > { %v399_v28 = vpop.permute.xlu1 %398 }
 0x204   : > { %728 = vpow2.f32 %v403_v27  ;;  %v402_v29 = vsub.f32 %v373_v12, %v399_v28 }
 0x206   : > { %v405_v30 = vmul.f32 1.442695, %v402_v29 }
 0x208   : > { %730 = vpow2.f32 %v405_v30 }
 0x209   : > { %732 = vpow2.f32 %v389_v36 }
 0x20a   : > { %734 = vpow2.f32 %v387_v37 }
 0x20e   : > { %v729_v31 = vpop.eup %728 }
 0x20f   : > { %v411_v32 = vsel %vm376_vm4, %v729_v31, 0.0 }
 0x210   : > { %412 = vadd.xlane.f32.xlu0 %v411_v32 }
 0x212   : > { %v731_v33 = vpop.eup %730 }
 0x213   : > { %v414_v34 = vsel %vm376_vm4, %v731_v33, 0.0  ;;  %v436_v35 = vpack.c.bf16 %v731_v33, %v729_v31  ;;  %v733_v38 = vpop.eup %732 }
 0x214   : > { %415 = vadd.xlane.f32.xlu1 %v414_v34  ;;  %v735_v39 = vpop.eup %734  ;;  %v410_v45 = vmul.f32 %v733_v38, %v408_v43 }
 0x215   : > { %692 = vmatmul.mubr.msk.bf16.vlgmr.msra.gmra.mrb[0].mxu1 %vm376_vm4, %v436_v35  ;;  %v409_v41 = vmul.f32 %v735_v39, %v407_v40 }
 0x225   : > { %431 = vperm.xlu1 %723, %v733_v38  }
 0x226   : > { %426 = vperm.xlu0 %724, %v735_v39  }
 0x29d   : > { %v413_v42 = vpop.xlane.xlu0 %412 }
 0x29e   : > { %v417_v44 = vadd.f32 %v413_v42, %v409_v41 }
 0x2a0   : > { %420 = vst.msk [vmem:[#allocation3] sm:$0xff] %vm294_vm2, %v417_v44 }
 0x2a1   : > { %v416_v46 = vpop.xlane.xlu1 %415 }
 0x2a2   : > { %v418_v47 = vadd.f32 %v416_v46, %v410_v45 }
 0x2a4   : > { %421 = vst.msk [vmem:[#allocation3 + $0x8] sm:$0xff] %vm294_vm2, %v418_v47 }
 0x2a5   : > { %v427_v53 = vpop.permute.xlu0 %426  ;;  %v432_v55 = vpop.permute.xlu1 %431 }
 0x2a6   : > { %v434_v56 = vmul.f32 %v427_v53, %v422_v52  ;;  %v435_v58 = vmul.f32 %v432_v55, %v423_v54 }
 0x2a7   : > { %v498_v48 = vld [vmem:[#allocation3] sm:$0xff] }
 0x2a8   : > { %736 = vrcp.f32 %v498_v48 }
 0x2ab   : > { %v499_v49 = vld [vmem:[#allocation3 + $0x8] sm:$0xff] }
 0x2ac   : > { %738 = vrcp.f32 %v499_v49 }
 0x2b2   : > { %v737_v50 = vpop.eup %736 }
 0x2b3   : > { %504 = vperm.xlu0 %724, %v737_v50  }
 0x2b6   : > { %v739_v51 = vpop.eup %738 }
 0x2b7   : > { %509 = vperm.xlu0 %724, %v739_v51  }
 0x2e8   : > { %v480_v57 = vpop.f32.mrb[0].mxu1 }
 0x2e9   : > { %v487_v59 = vadd.f32 %v480_v57, %v434_v56  ;;  %v693_v60 = vpop.f32.mrb[1].mxu1 }
 0x2ea   : > { %v483_v61 = vpop.f32.mrb[2].mxu1 }
 0x2eb   : > { %489 = vst.msk [vmem:[#allocation4] sm:$0xff] %vm299_vm0, %v487_v59  ;;  %v488_v62 = vadd.f32 %v483_v61, %v435_v58  ;;  %v694_v63 = vpop.f32.mrb[3].mxu1 }
 0x2ed   : > { %490 = vst.msk [vmem:[#allocation4 + $0x8] sm:$0xff] %vm299_vm0, %v488_v62 }
 0x2f2   : > { %v496_v0 = vld [vmem:[#allocation4] sm:$0xff] }
 0x2f4   : > { %v497_v4 = vld [vmem:[#allocation4 + $0x8] sm:$0xff] }
 0x332   : > { %v505_v1 = vpop.permute.xlu0 %504 }
 0x333   : > { %v512_v2 = vmul.f32 %v505_v1, %v496_v0 }
 0x335   : > { %v677_v3 = vpack.c.bf16 %v512_v2, %v512_v2 }
 0x336   : > { %v510_v5 = vpop.permute.xlu0 %509 }
 0x337   : > { %523 = vst.msk [vmem:[%s287_s28] sm:$0xf] %vm522_vm5, %v677_v3  ;;  %v513_v6 = vmul.f32 %v510_v5, %v497_v4 }
 0x339   : > { %v678_v7 = vpack.c.bf16 %v513_v6, %v513_v6 }
 0x33b   : > { %524 = vst.msk [vmem:[%s287_s28 + $0x4] sm:$0xf] %vm522_vm5, %v678_v7 }
 0x33c PF: > { %s13_s14 = sadd.s32 1, %s762_s14   ;;  %s856_s12 = smov %s758_s13 }
 0x33d   : > { %p10_p5 = scmp.ge.s32.totalorder %s13_s14, 18   ;;  %s857_s13 = smov %s859_s15 }
 0x33f   :  { %12 = sbr.rel (!%p10_p5) target bundleno = 2 (0x2), region = 76 }

// kernel: timesformer_forward.35
= control target key start
LH: loop header
LB: loop body
LE: loop exit
PB: predicated region body
PF: predicated region fallthrough
CT: control target
= control target key end

     0   :  { %vm28_vm0 = vcmask 261120   ;;  %v271_v1 = vmov 0.0   ;;  %vm221_vm1 = vcmask 257024   ;;  %s357_s1 = inlined_call_operand.vmem [shape: bf16[32,32], index: 1, kind: input, shape index: {}]   ;;  %s358_s0 = inlined_call_operand.vmem [shape: bf16[24,32], index: 0, kind: input, shape index: {}]   ;;  %s359_s3 = inlined_call_operand.vmem [shape: bf16[24,32], index: 3, kind: input, shape index: {}]   ;;  %s360_s2 = inlined_call_operand.vmem [shape: f32[1,32], index: 2, kind: input, shape index: {}]   ;;  %s361_s4 = inlined_call_operand.vmem [shape: f32[1,32], index: 4, kind: input, shape index: {}]   ;;  %s362_s5 = inlined_call_operand.vmem [shape: f32[1,32], index: 5, kind: input, shape index: {}]   ;;  %s363_s6 = inlined_call_operand.vmem [shape: bf16[24,32], index: 6, kind: output, shape index: {}]  }
   0x1   :  { %v261_v0 = vld [vmem:[%s357_s1] sm:$0xff]   ;;  %31 = vst.msk [vmem:[#allocation2 + $0x10] sm:$0xff] %vm28_vm0, %v271_v1  ;;  %29 = vst.msk [vmem:[#allocation2] sm:$0xff] %vm28_vm0, %v271_v1  ;;  %v262_v2 = vld [vmem:[%s357_s1 + $0x8] sm:$0xff]  }
   0x2   :  { %30 = vst.msk [vmem:[#allocation2 + $0x8] sm:$0xff] %vm28_vm0, %v271_v1  ;;  %252 = vmatprep.subr.bf16.mxu0 %v261_v0  ;;  %v263_v3 = vld [vmem:[%s358_s0] sm:$0xff]   ;;  %v264_v4 = vld [vmem:[%s358_s0 + $0x8] ss:$0 sps:$4 sm:$0xff]  }
   0x3   :  { %253 = vmatpush3.bf16.msra.mxu0 %v261_v0  ;;  %256 = vmatprep.mubr.msk.bf16.mxu0 %vm28_vm0, %v263_v3  ;;  %v141_v15 = vld [vmem:[%s359_s3 + $0x8] sm:$0xf]  ;;  %v245_v16 = vld [vmem:[%s359_s3] sm:$0xff]  }
   0x4   :  { %254 = vmatprep.subr.bf16.mxu0 %v262_v2  ;;  %v235_v17 = vld [vmem:[%s360_s2] ss:$0 sm:$0xff]  ;;  %v144_v18 = vunpack.c.l.bf16 %v141_v15  ;;  %v246_v20 = vunpack.c.l.bf16 %v245_v16  ;;  %v247_v24 = vunpack.c.h.bf16 %v245_v16 }
   0x5   :  { %v236_v58 = vld [vmem:[%s361_s4] ss:$0 sm:$0xff] }
   0x6   :  { %v237_v60 = vld [vmem:[%s362_s5] ss:$0 sm:$0xff] }
   0x7   :  { %255 = vmatpush3.bf16.msra.mxu0 %v262_v2 }
   0x8   :  { %v34_v5 = vld [vmem:[#allocation2 + $0x10] sm:$0xff]  ;;  %v32_v6 = vld [vmem:[#allocation2] sm:$0xff] }
   0x9   :  { %v33_v10 = vld [vmem:[#allocation2 + $0x8] sm:$0xff] }
   0xa   :  { %257 = vmatmul.mubr.msk.bf16.vlgmr.msra.gmra.mrb[0].mxu0 %vm28_vm0, %v264_v4 }
  0xdd   :  { %v258_v7 = vpop.f32.mrb[0].mxu0 }
  0xde   :  { %v119_v8 = vadd.f32 %v258_v7, %v34_v5  ;;  %v103_v9 = vpop.f32.mrb[1].mxu0 }
  0xdf   :  { %v117_v11 = vadd.f32 %v103_v9, %v32_v6  ;;  %v259_v12 = vpop.f32.mrb[2].mxu0 }
  0xe0   :  { %122 = vst.msk [vmem:[#allocation2 + $0x10] sm:$0xff] %vm28_vm0, %v119_v8  ;;  %v106_v13 = vpop.f32.mrb[3].mxu0 }
  0xe1   :  { %120 = vst.msk [vmem:[#allocation2] sm:$0xff] %vm28_vm0, %v117_v11  ;;  %v118_v14 = vadd.f32 %v106_v13, %v33_v10 }
  0xe3   :  { %121 = vst.msk [vmem:[#allocation2 + $0x8] sm:$0xff] %vm28_vm0, %v118_v14 }
  0xe7   :  { %v128_v19 = vld [vmem:[#allocation2 + $0x10] sm:$0xff] }
  0xe8   :  { %v138_v21 = vadd.f32 %v235_v17, %v128_v19  ;;  %v126_v22 = vld [vmem:[#allocation2] sm:$0xff] }
  0xe9   :  { %v136_v23 = vadd.f32 %v235_v17, %v126_v22 }
  0xea   :  { %v147_v25 = vadd.f32 %v144_v18, %v138_v21  ;;  %v127_v26 = vld [vmem:[#allocation2 + $0x8] sm:$0xff] }
  0xeb   :  { %v145_v27 = vadd.f32 %v246_v20, %v136_v23  ;;  %v137_v28 = vadd.f32 %v235_v17, %v127_v26 }
  0xec   :  { %v154_v29 = vsel %vm28_vm0, %v147_v25, 0.0 }
  0xed   :  { %155 = vadd.xlane.f32.xlu1 %v154_v29  ;;  %v148_v30 = vsel %vm28_vm0, %v145_v27, 0.0  ;;  %v146_v31 = vadd.f32 %v247_v24, %v137_v28 }
  0xee   :  { %149 = vadd.xlane.f32.xlu0 %v148_v30 }
  0xef   :  { %v151_v32 = vsel %vm28_vm0, %v146_v31, 0.0 }
  0xf2   :  { %152 = vadd.xlane.f32.xlu0 %v151_v32 }
 0x17a   :  { %v156_v33 = vpop.xlane.xlu1 %155 }
 0x17b   :  { %v160_v34 = vmul.f32 0.03125, %v156_v33  ;;  %v150_v35 = vpop.xlane.xlu0 %149 }
 0x17c   :  { %v158_v36 = vmul.f32 0.03125, %v150_v35 }
 0x17d   :  { %v163_v37 = vsub.f32 %v147_v25, %v160_v34 }
 0x17e   :  { %v161_v38 = vsub.f32 %v145_v27, %v158_v36 }
 0x17f   :  { %v153_v39 = vpop.xlane.xlu0 %152  ;;  %v166_v44 = vmul.f32 %v163_v37, %v163_v37 }
 0x180   :  { %v159_v40 = vmul.f32 0.03125, %v153_v39  ;;  %v164_v41 = vmul.f32 %v161_v38, %v161_v38 }
 0x181   :  { %v173_v46 = vsel %vm28_vm0, %v166_v44, 0.0 }
 0x182   :  { %v162_v42 = vsub.f32 %v146_v31, %v159_v40  ;;  %v167_v43 = vsel %vm28_vm0, %v164_v41, 0.0 }
 0x183   :  { %168 = vadd.xlane.f32.xlu1 %v167_v43 }
 0x184   :  { %v165_v45 = vmul.f32 %v162_v42, %v162_v42 }
 0x186   :  { %v170_v47 = vsel %vm28_vm0, %v165_v45, 0.0 }
 0x187   :  { %174 = vadd.xlane.f32.xlu1 %v173_v46  ;;  %171 = vadd.xlane.f32.xlu0 %v170_v47 }
 0x210   :  { %v169_v48 = vpop.xlane.xlu1 %168 }
 0x211   :  { %v176_v49 = vmul.f32 0.03125, %v169_v48 }
 0x213   :  { %v179_v50 = vadd.f32 1e-05, %v176_v49 }
 0x214   :  { %v175_v51 = vpop.xlane.xlu1 %174  ;;  %v172_v52 = vpop.xlane.xlu0 %171 }
 0x215   :  { %265 = vrsqrt.f32 %v179_v50  ;;  %v178_v53 = vmul.f32 0.03125, %v175_v51  ;;  %v177_v54 = vmul.f32 0.03125, %v172_v52 }
 0x217   :  { %v181_v55 = vadd.f32 1e-05, %v178_v53  ;;  %v180_v56 = vadd.f32 1e-05, %v177_v54 }
 0x219   :  { %267 = vrsqrt.f32 %v181_v55 }
 0x21a   :  { %269 = vrsqrt.f32 %v180_v56 }
 0x21f   :  { %v266_v57 = vpop.eup %265 }
 0x220   :  { %v185_v59 = vmul.f32 %v266_v57, %v161_v38 }
 0x222   :  { %v195_v61 = vmul.f32 %v236_v58, %v185_v59 }
 0x223   :  { %v268_v62 = vpop.eup %267 }
 0x224   :  { %v270_v63 = vpop.eup %269  ;;  %v205_v0 = vadd.f32 %v237_v60, %v195_v61  ;;  %v187_v1 = vmul.f32 %v268_v62, %v163_v37 }
 0x225   :  { %v186_v2 = vmul.f32 %v270_v63, %v162_v42 }
 0x226   :  { %v241_v3 = vpack.c.bf16 %v205_v0, %v205_v0  ;;  %v197_v4 = vmul.f32 %v236_v58, %v187_v1 }
 0x227   :  { %v196_v5 = vmul.f32 %v236_v58, %v186_v2 }
 0x228   :  { %222 = vst.msk [vmem:[%s363_s6] sm:$0xf] %vm221_vm1, %v241_v3  ;;  %v207_v6 = vadd.f32 %v237_v60, %v197_v4 }
 0x229   :  { %v206_v7 = vadd.f32 %v237_v60, %v196_v5 }
 0x22a   :  { %v243_v8 = vpack.c.bf16 %v207_v6, %v207_v6 }
 0x22b   :  { %v242_v9 = vpack.c.bf16 %v206_v7, %v206_v7 }
 0x22c   :  { %224 = vst.msk [vmem:[%s363_s6 + $0x8] sm:$0xf] %vm221_vm1, %v243_v8 }
 0x22d   :  { %223 = vst.msk [vmem:[%s363_s6 + $0x4] sm:$0xf] %vm221_vm1, %v242_v9 }

// kernel: timesformer_forward.36
= control target key start
LH: loop header
LB: loop body
LE: loop exit
PB: predicated region body
PF: predicated region fallthrough
CT: control target
= control target key end

     0   :  { %vm52_vm0 = vcmask 261120   ;;  %s257_s1 = inlined_call_operand.vmem [shape: bf16[32,128], index: 1, kind: input, shape index: {}]   ;;  %s258_s0 = inlined_call_operand.vmem [shape: bf16[24,32], index: 0, kind: input, shape index: {}]   ;;  %s259_s2 = inlined_call_operand.vmem [shape: f32[1,128], index: 2, kind: input, shape index: {}]   ;;  %s260_s3 = inlined_call_operand.vmem [shape: bf16[24,128], index: 3, kind: output, shape index: {}]  }
   0x1   :  { %v206_v0 = vld [vmem:[%s257_s1] sm:$0xff]   ;;  %v207_v1 = vld [vmem:[%s257_s1 + $0x8] sm:$0xff]  }
   0x2   :  { %198 = vmatprep.subr.bf16.mxu0 %v206_v0  ;;  %v208_v2 = vld [vmem:[%s258_s0] sm:$0xff]   ;;  %v209_v3 = vld [vmem:[%s258_s0 + $0x8] ss:$0 sps:$4 sm:$0xff]  }
   0x3   :  { %199 = vmatpush3.bf16.msra.mxu0 %v206_v0  ;;  %202 = vmatprep.mubr.msk.bf16.mxu0 %vm52_vm0, %v208_v2  ;;  %v182_v4 = vld [vmem:[%s259_s2] ss:$0 sm:$0xff] }
   0x4   :  { %200 = vmatprep.subr.bf16.mxu0 %v207_v1 }
   0x7   :  { %201 = vmatpush3.bf16.msra.mxu0 %v207_v1 }
   0xa   :  { %203 = vmatmul.mubr.msk.bf16.vlgmr.msra.gmra.mrb[0].mxu0 %vm52_vm0, %v209_v3 }
  0xdd   :  { %v204_v5 = vpop.f32.mrb[0].mxu0 }
  0xde   :  { %v128_v6 = vadd.f32 %v204_v5, %v182_v4  ;;  %v93_v7 = vpop.f32.mrb[1].mxu0 }
  0xdf   :  { %v126_v8 = vadd.f32 %v182_v4, %v93_v7  ;;  %v205_v9 = vpop.f32.mrb[2].mxu0 }
  0xe0   :  { %v134_v10 = vmul.f32 0.044715, %v128_v6  ;;  %v96_v11 = vpop.f32.mrb[3].mxu0  ;;  %v131_v29 = vmul.f32 0.5, %v128_v6 }
  0xe1   :  { %v132_v12 = vmul.f32 0.044715, %v126_v8  ;;  %v127_v13 = vadd.f32 %v182_v4, %v96_v11  ;;  %v129_v34 = vmul.f32 0.5, %v126_v8 }
  0xe2   :  { %v137_v14 = vmul.f32 %v134_v10, %v128_v6 }
  0xe3   :  { %v135_v15 = vmul.f32 %v132_v12, %v126_v8  ;;  %v133_v16 = vmul.f32 0.044715, %v127_v13  ;;  %v130_v35 = vmul.f32 0.5, %v127_v13 }
  0xe4   :  { %v140_v17 = vmul.f32 %v137_v14, %v128_v6 }
  0xe5   :  { %v138_v18 = vmul.f32 %v135_v15, %v126_v8  ;;  %v136_v19 = vmul.f32 %v133_v16, %v127_v13 }
  0xe6   :  { %v143_v20 = vadd.f32 %v140_v17, %v128_v6 }
  0xe7   :  { %v141_v21 = vadd.f32 %v138_v18, %v126_v8  ;;  %v139_v22 = vmul.f32 %v136_v19, %v127_v13 }
  0xe8   :  { %v146_v23 = vmul.f32 0.7978846, %v143_v20 }
  0xe9   :  { %v144_v24 = vmul.f32 0.7978846, %v141_v21  ;;  %v142_v25 = vadd.f32 %v139_v22, %v127_v13 }
  0xea   :  { %210 = vtanh.f32 %v146_v23 }
  0xeb   :  { %212 = vtanh.f32 %v144_v24  ;;  %v145_v26 = vmul.f32 0.7978846, %v142_v25 }
  0xed   :  { %214 = vtanh.f32 %v145_v26 }
  0xf4   :  { %v211_v27 = vpop.eup %210 }
  0xf5   :  { %v213_v28 = vpop.eup %212  ;;  %v152_v30 = vadd.f32 1.0, %v211_v27 }
  0xf6   :  { %v150_v31 = vadd.f32 1.0, %v213_v28 }
  0xf7   :  { %v215_v32 = vpop.eup %214  ;;  %v155_v33 = vmul.f32 %v152_v30, %v131_v29 }
  0xf8   :  { %v151_v36 = vadd.f32 1.0, %v215_v32  ;;  %v153_v38 = vmul.f32 %v150_v31, %v129_v34 }
  0xf9   :  { %v188_v37 = vpack.c.bf16 %v155_v33, %v155_v33 }
  0xfa   :  { %v154_v39 = vmul.f32 %v151_v36, %v130_v35 }
  0xfb   :  { %171 = vst [vmem:[%s260_s3 + $0x8] sm:$0xf] %v188_v37 }
  0xfc   :  { %v192_v40 = vpack.c.bf16 %v154_v39, %v153_v38 }
  0xfe   :  { %193 = vst [vmem:[%s260_s3] sm:$0xff] %v192_v40  }

// kernel: timesformer_forward.63
= control target key start
LH: loop header
LB: loop body
LE: loop exit
PB: predicated region body
PF: predicated region fallthrough
CT: control target
= control target key end

     0   :  { %vm21_vm0 = vcmask 7168   ;;  %v135_v0 = vmov 0.0   ;;  %vm136_vm1 = vmmov 0   ;;  %vm41_vm2 = vcmask 261120   ;;  %s175_s1 = inlined_call_operand.vmem [shape: bf16[32,1], index: 1, kind: input, shape index: {}]   ;;  %s176_s2 = inlined_call_operand.<no memory space> [shape: f32[1,1], index: 2, kind: input, shape index: {}]   ;;  %s177_s0 = inlined_call_operand.vmem [shape: bf16[8,32], index: 0, kind: input, shape index: {}]   ;;  %s178_s3 = inlined_call_operand.vmem [shape: f32[8,1], index: 3, kind: output, shape index: {}]  }
   0x1   :  { %22 = vst.msk [vmem:[#allocation2] sm:$0xff] %vm21_vm0, %v135_v0  ;;  %119 = vmatprep.subr.bf16.mxu0 %v135_v0  ;;  %v129_v1 = vld [vmem:[%s175_s1] sm:$0xff]   ;;  %123 = vmatprep.mubr.msk.bf16.mxu0 %vm136_vm1, %v135_v0  ;;  %v8_v2 = vstv %s176_s2  ;;  %v130_v3 = vld [vmem:[%s175_s1 + $0x8] sm:$0xff]  }
   0x2   :  { %9 = vst [vmem:[#allocation3] sm:$0x1] %v8_v2  ;;  %120 = vmatpush3.bf16.msra.mxu0 %v129_v1  ;;  %v24_v4 = vld [vmem:[%s177_s0] sm:$0xf] }
   0x3   :  { %121 = vmatprep.subr.bf16.mxu0 %v135_v0 }
   0x6   :  { %122 = vmatpush3.bf16.msra.mxu0 %v130_v3 }
   0x8   :  { %v23_v5 = vld [vmem:[#allocation2] sm:$0xff] }
   0x9   :  { %124 = vmatmul.mubr.msk.bf16.vlgmr.msra.gmra.mrb[0].mxu0 %vm41_vm2, %v24_v4  ;;  %v114_v11 = vld [vmem:[#allocation3] ss:$0 sm:$0xff] }
  0xdc   :  { %v79_v6 = vpop.f32.mrb[0].mxu0 }
  0xdd   :  { %v85_v7 = vadd.f32 %v79_v6, %v23_v5  ;;  %v125_v8 = vpop.f32.mrb[1].mxu0 }
  0xde   :  { %v82_v9 = vpop.f32.mrb[2].mxu0 }
  0xdf   :  { %87 = vst.msk [vmem:[#allocation2] sm:$0xff] %vm21_vm0, %v85_v7  ;;  %v126_v10 = vpop.f32.mrb[3].mxu0 }
  0xe6   :  { %v91_v12 = vld [vmem:[#allocation2] sm:$0xff] }
  0xe7   :  { %v99_v13 = vadd.f32 %v114_v11, %v91_v12 }
  0xe9   :  { %v115_v14 = vmul.f32 -1.442695, %v99_v13 }
  0xeb   :  { %131 = vpow2.f32 %v115_v14 }
  0xf5   :  { %v132_v15 = vpop.eup %131 }
  0xf6   :  { %v103_v16 = vadd.f32 1.0, %v132_v15 }
  0xf8   :  { %133 = vrcp.f32 %v103_v16 }
 0x102   :  { %v134_v17 = vpop.eup %133 }
 0x103   :  { %106 = vst.msk [vmem:[%s178_s3] sm:$0xff] %vm21_vm0, %v134_v17 }

// kernel: timesformer_forward.37
= control target key start
LH: loop header
LB: loop body
LE: loop exit
PB: predicated region body
PF: predicated region fallthrough
CT: control target
= control target key end

     0   :  { %vm28_vm0 = vcmask 261120   ;;  %v343_v1 = vmov 0.0   ;;  %vm265_vm1 = vcmask 257024   ;;  %s445_s1 = inlined_call_operand.vmem [shape: bf16[128,32], index: 1, kind: input, shape index: {}]   ;;  %s446_s0 = inlined_call_operand.vmem [shape: bf16[24,128], index: 0, kind: input, shape index: {}]   ;;  %s447_s3 = inlined_call_operand.vmem [shape: bf16[24,32], index: 3, kind: input, shape index: {}]   ;;  %s448_s2 = inlined_call_operand.vmem [shape: f32[1,32], index: 2, kind: input, shape index: {}]   ;;  %s449_s4 = inlined_call_operand.vmem [shape: f32[1,32], index: 4, kind: input, shape index: {}]   ;;  %s450_s5 = inlined_call_operand.vmem [shape: f32[1,32], index: 5, kind: input, shape index: {}]   ;;  %s451_s6 = inlined_call_operand.vmem [shape: bf16[24,32], index: 6, kind: output, shape index: {}]  }
   0x1   :  { %v327_v0 = vld [vmem:[%s445_s1] sm:$0xff]   ;;  %31 = vst.msk [vmem:[#allocation2 + $0x10] sm:$0xff] %vm28_vm0, %v343_v1  ;;  %29 = vst.msk [vmem:[#allocation2] sm:$0xff] %vm28_vm0, %v343_v1  ;;  %v328_v2 = vld [vmem:[%s445_s1 + $0x8] sm:$0xff]  }
   0x2   :  { %30 = vst.msk [vmem:[#allocation2 + $0x8] sm:$0xff] %vm28_vm0, %v343_v1  ;;  %306 = vmatprep.subr.bf16.mxu0 %v327_v0  ;;  %v329_v3 = vld [vmem:[%s445_s1 + $0x10] sm:$0xff]   ;;  %v330_v4 = vld [vmem:[%s445_s1 + $0x18] sm:$0xff]   ;;  %v335_v5 = vld [vmem:[%s446_s0] sm:$0xff]  }
   0x3   :  { %307 = vmatpush3.bf16.msra.mxu0 %v327_v0  ;;  %322 = vmatprep.mubr.bf16.mxu0 %v335_v5  ;;  %v331_v6 = vld [vmem:[%s445_s1 + $0x20] sm:$0xff]   ;;  %v332_v7 = vld [vmem:[%s445_s1 + $0x28] sm:$0xff]   ;;  %v333_v8 = vld [vmem:[%s445_s1 + $0x30] sm:$0xff]  }
   0x4   :  { %308 = vmatprep.subr.bf16.mxu0 %v328_v2  ;;  %v334_v9 = vld [vmem:[%s445_s1 + $0x38] sm:$0xff]   ;;  %v336_v10 = vld [vmem:[%s446_s0 + $0x8] ss:$0 sps:$4 sm:$0xff]   ;;  %v293_v22 = vld [vmem:[%s447_s3] sm:$0xff]  }
   0x5   :  { %v185_v21 = vld [vmem:[%s447_s3 + $0x8] sm:$0xf]  ;;  %v283_v23 = vld [vmem:[%s448_s2] ss:$0 sm:$0xff]  ;;  %v294_v26 = vunpack.c.l.bf16 %v293_v22  ;;  %v295_v30 = vunpack.c.h.bf16 %v293_v22 }
   0x6   :  { %v188_v24 = vunpack.c.l.bf16 %v185_v21  ;;  %v284_v0 = vld [vmem:[%s449_s4] ss:$0 sm:$0xff] }
   0x7   :  { %309 = vmatpush3.bf16.msra.mxu0 %v328_v2  ;;  %v285_v2 = vld [vmem:[%s450_s5] ss:$0 sm:$0xff] }
   0x8   :  { %310 = vmatprep.subr.bf16.mxu0 %v329_v3  ;;  %v34_v11 = vld [vmem:[#allocation2 + $0x10] sm:$0xff]  ;;  %v32_v12 = vld [vmem:[#allocation2] sm:$0xff] }
   0x9   :  { %v33_v16 = vld [vmem:[#allocation2 + $0x8] sm:$0xff] }
   0xb   :  { %311 = vmatpush3.bf16.msra.mxu0 %v329_v3 }
   0xc   :  { %312 = vmatprep.subr.bf16.mxu0 %v330_v4 }
   0xf   :  { %313 = vmatpush3.bf16.msra.mxu0 %v330_v4 }
  0x10   :  { %314 = vmatprep.subr.bf16.mxu0 %v331_v6 }
  0x13   :  { %315 = vmatpush3.bf16.msra.mxu0 %v331_v6 }
  0x14   :  { %316 = vmatprep.subr.bf16.mxu0 %v332_v7 }
  0x17   :  { %317 = vmatpush3.bf16.msra.mxu0 %v332_v7 }
  0x18   :  { %318 = vmatprep.subr.bf16.mxu0 %v333_v8 }
  0x1b   :  { %319 = vmatpush3.bf16.msra.mxu0 %v333_v8 }
  0x1c   :  { %320 = vmatprep.subr.bf16.mxu0 %v334_v9 }
  0x1f   :  { %321 = vmatpush3.bf16.msra.mxu0 %v334_v9 }
  0x22   :  { %323 = vmatmul.mubr.bf16.vlgmr.msra.gmra.mrb[0].mxu0 %v336_v10 }
  0xf5   :  { %v324_v13 = vpop.f32.mrb[0].mxu0 }
  0xf6   :  { %v162_v14 = vadd.f32 %v324_v13, %v34_v11  ;;  %v146_v15 = vpop.f32.mrb[1].mxu0 }
  0xf7   :  { %v160_v17 = vadd.f32 %v146_v15, %v32_v12  ;;  %v325_v18 = vpop.f32.mrb[2].mxu0 }
  0xf8   :  { %166 = vst.msk [vmem:[#allocation2 + $0x10] sm:$0xff] %vm28_vm0, %v162_v14  ;;  %v149_v19 = vpop.f32.mrb[3].mxu0 }
  0xf9   :  { %164 = vst.msk [vmem:[#allocation2] sm:$0xff] %vm28_vm0, %v160_v17  ;;  %v161_v20 = vadd.f32 %v149_v19, %v33_v16 }
  0xfb   :  { %165 = vst.msk [vmem:[#allocation2 + $0x8] sm:$0xff] %vm28_vm0, %v161_v20 }
  0xff   :  { %v172_v25 = vld [vmem:[#allocation2 + $0x10] sm:$0xff] }
 0x100   :  { %v182_v27 = vadd.f32 %v283_v23, %v172_v25  ;;  %v170_v28 = vld [vmem:[#allocation2] sm:$0xff] }
 0x101   :  { %v180_v29 = vadd.f32 %v283_v23, %v170_v28 }
 0x102   :  { %v191_v31 = vadd.f32 %v188_v24, %v182_v27  ;;  %v171_v32 = vld [vmem:[#allocation2 + $0x8] sm:$0xff] }
 0x103   :  { %v189_v33 = vadd.f32 %v294_v26, %v180_v29  ;;  %v181_v34 = vadd.f32 %v283_v23, %v171_v32 }
 0x104   :  { %v198_v35 = vsel %vm28_vm0, %v191_v31, 0.0 }
 0x105   :  { %199 = vadd.xlane.f32.xlu1 %v198_v35  ;;  %v192_v36 = vsel %vm28_vm0, %v189_v33, 0.0  ;;  %v190_v37 = vadd.f32 %v295_v30, %v181_v34 }
 0x106   :  { %193 = vadd.xlane.f32.xlu0 %v192_v36 }
 0x107   :  { %v195_v38 = vsel %vm28_vm0, %v190_v37, 0.0 }
 0x10a   :  { %196 = vadd.xlane.f32.xlu0 %v195_v38 }
 0x192   :  { %v200_v39 = vpop.xlane.xlu1 %199 }
 0x193   :  { %v204_v40 = vmul.f32 0.03125, %v200_v39  ;;  %v194_v41 = vpop.xlane.xlu0 %193 }
 0x194   :  { %v202_v42 = vmul.f32 0.03125, %v194_v41 }
 0x195   :  { %v207_v43 = vsub.f32 %v191_v31, %v204_v40 }
 0x196   :  { %v205_v44 = vsub.f32 %v189_v33, %v202_v42 }
 0x197   :  { %v197_v45 = vpop.xlane.xlu0 %196  ;;  %v210_v50 = vmul.f32 %v207_v43, %v207_v43 }
 0x198   :  { %v203_v46 = vmul.f32 0.03125, %v197_v45  ;;  %v208_v47 = vmul.f32 %v205_v44, %v205_v44 }
 0x199   :  { %v217_v52 = vsel %vm28_vm0, %v210_v50, 0.0 }
 0x19a   :  { %v206_v48 = vsub.f32 %v190_v37, %v203_v46  ;;  %v211_v49 = vsel %vm28_vm0, %v208_v47, 0.0 }
 0x19b   :  { %212 = vadd.xlane.f32.xlu1 %v211_v49 }
 0x19c   :  { %v209_v51 = vmul.f32 %v206_v48, %v206_v48 }
 0x19e   :  { %v214_v53 = vsel %vm28_vm0, %v209_v51, 0.0 }
 0x19f   :  { %218 = vadd.xlane.f32.xlu1 %v217_v52  ;;  %215 = vadd.xlane.f32.xlu0 %v214_v53 }
 0x228   :  { %v213_v54 = vpop.xlane.xlu1 %212 }
 0x229   :  { %v220_v55 = vmul.f32 0.03125, %v213_v54 }
 0x22b   :  { %v223_v56 = vadd.f32 1e-05, %v220_v55 }
 0x22c   :  { %v219_v57 = vpop.xlane.xlu1 %218  ;;  %v216_v58 = vpop.xlane.xlu0 %215 }
 0x22d   :  { %337 = vrsqrt.f32 %v223_v56  ;;  %v222_v59 = vmul.f32 0.03125, %v219_v57  ;;  %v221_v60 = vmul.f32 0.03125, %v216_v58 }
 0x22f   :  { %v225_v61 = vadd.f32 1e-05, %v222_v59  ;;  %v224_v62 = vadd.f32 1e-05, %v221_v60 }
 0x231   :  { %339 = vrsqrt.f32 %v225_v61 }
 0x232   :  { %341 = vrsqrt.f32 %v224_v62 }
 0x237   :  { %v338_v63 = vpop.eup %337 }
 0x238   :  { %v229_v1 = vmul.f32 %v338_v63, %v205_v44 }
 0x23a   :  { %v239_v3 = vmul.f32 %v284_v0, %v229_v1 }
 0x23b   :  { %v340_v4 = vpop.eup %339 }
 0x23c   :  { %v342_v5 = vpop.eup %341  ;;  %v249_v6 = vadd.f32 %v285_v2, %v239_v3  ;;  %v231_v7 = vmul.f32 %v340_v4, %v207_v43 }
 0x23d   :  { %v230_v8 = vmul.f32 %v342_v5, %v206_v48 }
 0x23e   :  { %v289_v9 = vpack.c.bf16 %v249_v6, %v249_v6  ;;  %v241_v10 = vmul.f32 %v284_v0, %v231_v7 }
 0x23f   :  { %v240_v11 = vmul.f32 %v284_v0, %v230_v8 }
 0x240   :  { %266 = vst.msk [vmem:[%s451_s6] sm:$0xf] %vm265_vm1, %v289_v9  ;;  %v251_v12 = vadd.f32 %v285_v2, %v241_v10 }
 0x241   :  { %v250_v13 = vadd.f32 %v285_v2, %v240_v11 }
 0x242   :  { %v291_v14 = vpack.c.bf16 %v251_v12, %v251_v12 }
 0x243   :  { %v290_v15 = vpack.c.bf16 %v250_v13, %v250_v13 }
 0x244   :  { %268 = vst.msk [vmem:[%s451_s6 + $0x8] sm:$0xf] %vm265_vm1, %v291_v14 }
 0x245   :  { %267 = vst.msk [vmem:[%s451_s6 + $0x4] sm:$0xf] %vm265_vm1, %v290_v15 }

</bundles_post_ra>
